<compile_context>
chip_gen: v7x
topology: tpu7x:2x2x1
jax: 0.10.0
libtpu: 0.0.40
codegen_flags: <defaults>
</compile_context>

<pallas_src>
import functools

import jax
import jax.numpy as jnp
from jax import lax
from jax.experimental import pallas as pl
from jax.experimental.pallas import tpu as pltpu


# ----------------------------------------------------------------------------
# Fused depthwise-3x3 kernel: pad-in-VMEM + 9 shifted multiply-adds + bias.
# ----------------------------------------------------------------------------
def _dwconv_kernel(x_ref, w_ref, b_ref, o_ref, xpad_ref, *, H, W):
    tc = x_ref.shape[-1]

    # Build the zero-padded plane in VMEM scratch (scratch persists across
    # grid steps, so re-zero the halo every step for megacore safety).
    xpad_ref[...] = jnp.zeros_like(xpad_ref)
    xpad_ref[1:H + 1, 1:W + 1, :] = x_ref[...]

    w = w_ref[...]                                   # (9, tc), row j = dy*3+dx
    b = b_ref[...]                                   # (1, tc)

    # 9 statically-shifted views of the padded plane, accumulated on the VPU.
    acc = xpad_ref[0:H, 0:W, :] * w[0].reshape(1, 1, tc)
    for j in range(1, 9):
        dy, dx = j // 3, j % 3
        acc = acc + xpad_ref[dy:dy + H, dx:dx + W, :] * w[j].reshape(1, 1, tc)

    o_ref[...] = (acc + b.reshape(1, 1, tc)).astype(o_ref.dtype)


# ----------------------------------------------------------------------------
# Wrapper
# ----------------------------------------------------------------------------
def dwconv_pallas(x, H, W, weight, bias, *, channel_tile=128):
    """x: (B, N, C); weight: (C, 1, 3, 3) (PyTorch layout); bias: (C,)."""
    B, N, C = x.shape
    assert N == H * W

    # channel tile: lane-dense (multiple of 128) when possible.
    tc = channel_tile if C % channel_tile == 0 else C
    # TODO(synk): for very large H*W add a row-tiled grid axis with a 1-row
    # halo (manual DMA) to stay under v7x's 64 MiB VMEM; unnecessary at
    # typical simVit sizes since the per-batch plane is only H*W*tc*4 bytes.

    x4 = x.reshape(B, H, W, C)                       # free view, channels-last
    w9c = weight.reshape(C, 9).T                     # (9, C): row j = (dy, dx)
    b2 = bias.reshape(1, C)

    grid = (B, C // tc)
    out4 = pl.pallas_call(
        functools.partial(_dwconv_kernel, H=H, W=W),
        out_shape=jax.ShapeDtypeStruct((B, H, W, C), x.dtype),
        grid=grid,
        in_specs=[
            pl.BlockSpec((None, H, W, tc), lambda b, c: (b, 0, 0, c)),
            pl.BlockSpec((9, tc), lambda b, c: (0, c)),
            pl.BlockSpec((1, tc), lambda b, c: (0, c)),
        ],
        out_specs=pl.BlockSpec((None, H, W, tc), lambda b, c: (b, 0, 0, c)),
        scratch_shapes=[pltpu.VMEM((H + 2, W + 2, tc), jnp.float32)],
        compiler_params=pltpu.CompilerParams(
            dimension_semantics=("parallel", "parallel")),
    )(x4, w9c, b2)

    return out4.reshape(B, N, C)                     # free view back to (B,N,C)


# ----------------------------------------------------------------------------
# Pure-JAX reference (mirrors the PyTorch forward) for correctness check
# ----------------------------------------------------------------------------
def dwconv_ref(x, H, W, weight, bias):
    B, N, C = x.shape
    xi = jnp.transpose(x, (0, 2, 1)).reshape(B, C, H, W)
    out = lax.conv_general_dilated(
        xi, weight, window_strides=(1, 1), padding=((1, 1), (1, 1)),
        dimension_numbers=("NCHW", "OIHW", "NCHW"),
        feature_group_count=C)
    out = out + bias.reshape(1, C, 1, 1)
    return jnp.transpose(out.reshape(B, C, N), (0, 2, 1))


if __name__ == "__main__":
    B, H, W, C = 2, 16, 16, 256
    N = H * W

    key = jax.random.PRNGKey(0)
    k1, k2, k3 = jax.random.split(key, 3)
    x = jax.random.normal(k1, (B, N, C), jnp.float32)
    # deterministic synthetic parameters (PyTorch Conv2d depthwise layout)
    weight = 0.1 * jax.random.normal(k2, (C, 1, 3, 3), jnp.float32)
    bias = 0.1 * jax.random.normal(k3, (C,), jnp.float32)

    y = dwconv_pallas(x, H, W, weight, bias)
    y = jax.block_until_ready(y)

    y_ref = dwconv_ref(x, H, W, weight, bias)
    assert y.shape == (B, N, C)
    err = float(jnp.max(jnp.abs(y - y_ref)))
    assert err < 1e-4, f"max abs err {err}"
    print("KERNEL_OK")
</pallas_src>

<mosaic_0001>
module attributes {stable_mosaic.version = 11 : i64} {
  func.func @_dwconv_kernel(%arg0: i32, %arg1: i32, %arg2: memref<1x16x16x128xf32, #tpu.memory_space<vmem>>, %arg3: memref<9x128xf32, #tpu.memory_space<vmem>>, %arg4: memref<1x128xf32, #tpu.memory_space<vmem>>, %arg5: memref<1x16x16x128xf32, #tpu.memory_space<vmem>>, %arg6: memref<18x18x128xf32, #tpu.memory_space<vmem>>) attributes {dimension_semantics = [#tpu.dimension_semantics<parallel>, #tpu.dimension_semantics<parallel>], iteration_bounds = array<i64: 2, 2>, scalar_prefetch = 0 : i64, scratch_operands = 1 : i64, tpu.core_type = #tpu.core_type<tc>, window_params = [{transform_indices = @transform_0, window_bounds = array<i64: 1, 16, 16, 128>}, {transform_indices = @transform_1, window_bounds = array<i64: 9, 128>}, {transform_indices = @transform_2, window_bounds = array<i64: 1, 128>}, {transform_indices = @transform_3, window_bounds = array<i64: 1, 16, 16, 128>}]} {
    %cst = arith.constant 0.000000e+00 : f32
    %0 = vector.broadcast %cst : f32 to vector<18x18x128xf32>
    %c0 = arith.constant 0 : index
    %c0_0 = arith.constant 0 : index
    %c0_1 = arith.constant 0 : index
    %1 = vector.load %arg6[%c0, %c0_0, %c0_1] : memref<18x18x128xf32, #tpu.memory_space<vmem>>, vector<18x18x128xf32>
    tpu.vector_store %arg6[%c0, %c0_0, %c0_1], %0 {strides = array<i32>} : memref<18x18x128xf32, #tpu.memory_space<vmem>>, vector<18x18x128xf32>,
    %c0_2 = arith.constant 0 : index
    %c0_3 = arith.constant 0 : index
    %c0_4 = arith.constant 0 : index
    %c0_5 = arith.constant 0 : index
    %2 = vector.load %arg2[%c0_2, %c0_3, %c0_4, %c0_5] : memref<1x16x16x128xf32, #tpu.memory_space<vmem>>, vector<1x16x16x128xf32>
    %3 = vector.shape_cast %2 : vector<1x16x16x128xf32> to vector<16x16x128xf32>
    %c1 = arith.constant 1 : index
    %c1_6 = arith.constant 1 : index
    %c0_7 = arith.constant 0 : index
    %4 = vector.load %arg6[%c1, %c1_6, %c0_7] : memref<18x18x128xf32, #tpu.memory_space<vmem>>, vector<16x16x128xf32>
    tpu.vector_store %arg6[%c1, %c1_6, %c0_7], %3 {strides = array<i32>} : memref<18x18x128xf32, #tpu.memory_space<vmem>>, vector<16x16x128xf32>,
    %c0_8 = arith.constant 0 : index
    %c0_9 = arith.constant 0 : index
    %5 = vector.load %arg3[%c0_8, %c0_9] : memref<9x128xf32, #tpu.memory_space<vmem>>, vector<9x128xf32>
    %c0_10 = arith.constant 0 : index
    %c0_11 = arith.constant 0 : index
    %6 = vector.load %arg4[%c0_10, %c0_11] : memref<1x128xf32, #tpu.memory_space<vmem>>, vector<1x128xf32>
    %c0_12 = arith.constant 0 : index
    %c0_13 = arith.constant 0 : index
    %c0_14 = arith.constant 0 : index
    %7 = vector.load %arg6[%c0_12, %c0_13, %c0_14] : memref<18x18x128xf32, #tpu.memory_space<vmem>>, vector<16x16x128xf32>
    %8 = vector.extract_strided_slice %5 {offsets = [0, 0], sizes = [1, 128], strides = [1, 1]} : vector<9x128xf32> to vector<1x128xf32>
    %9 = vector.shape_cast %8 : vector<1x128xf32> to vector<128xf32>
    %10 = vector.shape_cast %9 : vector<128xf32> to vector<1x1x128xf32>
    %11 = vector.broadcast %10 : vector<1x1x128xf32> to vector<16x16x128xf32>
    %12 = arith.mulf %7, %11 : vector<16x16x128xf32>
    %c0_15 = arith.constant 0 : index
    %c1_16 = arith.constant 1 : index
    %c0_17 = arith.constant 0 : index
    %13 = vector.load %arg6[%c0_15, %c1_16, %c0_17] : memref<18x18x128xf32, #tpu.memory_space<vmem>>, vector<16x16x128xf32>
    %14 = vector.extract_strided_slice %5 {offsets = [1, 0], sizes = [1, 128], strides = [1, 1]} : vector<9x128xf32> to vector<1x128xf32>
    %15 = vector.shape_cast %14 : vector<1x128xf32> to vector<128xf32>
    %16 = vector.shape_cast %15 : vector<128xf32> to vector<1x1x128xf32>
    %17 = vector.broadcast %16 : vector<1x1x128xf32> to vector<16x16x128xf32>
    %18 = arith.mulf %13, %17 : vector<16x16x128xf32>
    %19 = arith.addf %12, %18 : vector<16x16x128xf32>
    %c0_18 = arith.constant 0 : index
    %c2 = arith.constant 2 : index
    %c0_19 = arith.constant 0 : index
    %20 = vector.load %arg6[%c0_18, %c2, %c0_19] : memref<18x18x128xf32, #tpu.memory_space<vmem>>, vector<16x16x128xf32>
    %21 = vector.extract_strided_slice %5 {offsets = [2, 0], sizes = [1, 128], strides = [1, 1]} : vector<9x128xf32> to vector<1x128xf32>
    %22 = vector.shape_cast %21 : vector<1x128xf32> to vector<128xf32>
    %23 = vector.shape_cast %22 : vector<128xf32> to vector<1x1x128xf32>
    %24 = vector.broadcast %23 : vector<1x1x128xf32> to vector<16x16x128xf32>
    %25 = arith.mulf %20, %24 : vector<16x16x128xf32>
    %26 = arith.addf %19, %25 : vector<16x16x128xf32>
    %c1_20 = arith.constant 1 : index
    %c0_21 = arith.constant 0 : index
    %c0_22 = arith.constant 0 : index
    %27 = vector.load %arg6[%c1_20, %c0_21, %c0_22] : memref<18x18x128xf32, #tpu.memory_space<vmem>>, vector<16x16x128xf32>
    %28 = vector.extract_strided_slice %5 {offsets = [3, 0], sizes = [1, 128], strides = [1, 1]} : vector<9x128xf32> to vector<1x128xf32>
    %29 = vector.shape_cast %28 : vector<1x128xf32> to vector<128xf32>
    %30 = vector.shape_cast %29 : vector<128xf32> to vector<1x1x128xf32>
    %31 = vector.broadcast %30 : vector<1x1x128xf32> to vector<16x16x128xf32>
    %32 = arith.mulf %27, %31 : vector<16x16x128xf32>
    %33 = arith.addf %26, %32 : vector<16x16x128xf32>
    %c1_23 = arith.constant 1 : index
    %c1_24 = arith.constant 1 : index
    %c0_25 = arith.constant 0 : index
    %34 = vector.load %arg6[%c1_23, %c1_24, %c0_25] : memref<18x18x128xf32, #tpu.memory_space<vmem>>, vector<16x16x128xf32>
    %35 = vector.extract_strided_slice %5 {offsets = [4, 0], sizes = [1, 128], strides = [1, 1]} : vector<9x128xf32> to vector<1x128xf32>
    %36 = vector.shape_cast %35 : vector<1x128xf32> to vector<128xf32>
    %37 = vector.shape_cast %36 : vector<128xf32> to vector<1x1x128xf32>
    %38 = vector.broadcast %37 : vector<1x1x128xf32> to vector<16x16x128xf32>
    %39 = arith.mulf %34, %38 : vector<16x16x128xf32>
    %40 = arith.addf %33, %39 : vector<16x16x128xf32>
    %c1_26 = arith.constant 1 : index
    %c2_27 = arith.constant 2 : index
    %c0_28 = arith.constant 0 : index
    %41 = vector.load %arg6[%c1_26, %c2_27, %c0_28] : memref<18x18x128xf32, #tpu.memory_space<vmem>>, vector<16x16x128xf32>
    %42 = vector.extract_strided_slice %5 {offsets = [5, 0], sizes = [1, 128], strides = [1, 1]} : vector<9x128xf32> to vector<1x128xf32>
    %43 = vector.shape_cast %42 : vector<1x128xf32> to vector<128xf32>
    %44 = vector.shape_cast %43 : vector<128xf32> to vector<1x1x128xf32>
    %45 = vector.broadcast %44 : vector<1x1x128xf32> to vector<16x16x128xf32>
    %46 = arith.mulf %41, %45 : vector<16x16x128xf32>
    %47 = arith.addf %40, %46 : vector<16x16x128xf32>
    %c2_29 = arith.constant 2 : index
    %c0_30 = arith.constant 0 : index
    %c0_31 = arith.constant 0 : index
    %48 = vector.load %arg6[%c2_29, %c0_30, %c0_31] : memref<18x18x128xf32, #tpu.memory_space<vmem>>, vector<16x16x128xf32>
    %49 = vector.extract_strided_slice %5 {offsets = [6, 0], sizes = [1, 128], strides = [1, 1]} : vector<9x128xf32> to vector<1x128xf32>
    %50 = vector.shape_cast %49 : vector<1x128xf32> to vector<128xf32>
    %51 = vector.shape_cast %50 : vector<128xf32> to vector<1x1x128xf32>
    %52 = vector.broadcast %51 : vector<1x1x128xf32> to vector<16x16x128xf32>
    %53 = arith.mulf %48, %52 : vector<16x16x128xf32>
    %54 = arith.addf %47, %53 : vector<16x16x128xf32>
    %c2_32 = arith.constant 2 : index
    %c1_33 = arith.constant 1 : index
    %c0_34 = arith.constant 0 : index
    %55 = vector.load %arg6[%c2_32, %c1_33, %c0_34] : memref<18x18x128xf32, #tpu.memory_space<vmem>>, vector<16x16x128xf32>
    %56 = vector.extract_strided_slice %5 {offsets = [7, 0], sizes = [1, 128], strides = [1, 1]} : vector<9x128xf32> to vector<1x128xf32>
    %57 = vector.shape_cast %56 : vector<1x128xf32> to vector<128xf32>
    %58 = vector.shape_cast %57 : vector<128xf32> to vector<1x1x128xf32>
    %59 = vector.broadcast %58 : vector<1x1x128xf32> to vector<16x16x128xf32>
    %60 = arith.mulf %55, %59 : vector<16x16x128xf32>
    %61 = arith.addf %54, %60 : vector<16x16x128xf32>
    %c2_35 = arith.constant 2 : index
    %c2_36 = arith.constant 2 : index
    %c0_37 = arith.constant 0 : index
    %62 = vector.load %arg6[%c2_35, %c2_36, %c0_37] : memref<18x18x128xf32, #tpu.memory_space<vmem>>, vector<16x16x128xf32>
    %63 = vector.extract_strided_slice %5 {offsets = [8, 0], sizes = [1, 128], strides = [1, 1]} : vector<9x128xf32> to vector<1x128xf32>
    %64 = vector.shape_cast %63 : vector<1x128xf32> to vector<128xf32>
    %65 = vector.shape_cast %64 : vector<128xf32> to vector<1x1x128xf32>
    %66 = vector.broadcast %65 : vector<1x1x128xf32> to vector<16x16x128xf32>
    %67 = arith.mulf %62, %66 : vector<16x16x128xf32>
    %68 = arith.addf %61, %67 : vector<16x16x128xf32>
    %69 = vector.shape_cast %6 : vector<1x128xf32> to vector<1x1x128xf32>
    %70 = vector.broadcast %69 : vector<1x1x128xf32> to vector<16x16x128xf32>
    %71 = arith.addf %68, %70 : vector<16x16x128xf32>
    %c0_38 = arith.constant 0 : index
    %c0_39 = arith.constant 0 : index
    %c0_40 = arith.constant 0 : index
    %c0_41 = arith.constant 0 : index
    %72 = vector.load %arg5[%c0_38, %c0_39, %c0_40, %c0_41] : memref<1x16x16x128xf32, #tpu.memory_space<vmem>>, vector<1x16x16x128xf32>
    %73 = vector.shape_cast %72 : vector<1x16x16x128xf32> to vector<16x16x128xf32>
    %74 = vector.shape_cast %71 : vector<16x16x128xf32> to vector<1x16x16x128xf32>
    tpu.vector_store %arg5[%c0_38, %c0_39, %c0_40, %c0_41], %74 {strides = array<i32>} : memref<1x16x16x128xf32, #tpu.memory_space<vmem>>, vector<1x16x16x128xf32>,
    return
  }
  func.func @transform_0(%arg0: i32, %arg1: i32) -> (i32, i32, i32, i32) {
    %c0_i32 = arith.constant 0 : i32
    %c0_i32_0 = arith.constant 0 : i32
    %c0_i32_1 = arith.constant 0 : i32
    return %arg0, %c0_i32, %c0_i32_0, %arg1 : i32, i32, i32, i32
  }
  func.func @transform_1(%arg0: i32, %arg1: i32) -> (i32, i32) {
    %c0_i32 = arith.constant 0 : i32
    %c0_i32_0 = arith.constant 0 : i32
    return %c0_i32, %arg1 : i32, i32
  }
  func.func @transform_2(%arg0: i32, %arg1: i32) -> (i32, i32) {
    %c0_i32 = arith.constant 0 : i32
    %c0_i32_0 = arith.constant 0 : i32
    return %c0_i32, %arg1 : i32, i32
  }
  func.func @transform_3(%arg0: i32, %arg1: i32) -> (i32, i32, i32, i32) {
    %c0_i32 = arith.constant 0 : i32
    %c0_i32_0 = arith.constant 0 : i32
    %c0_i32_1 = arith.constant 0 : i32
    return %arg0, %c0_i32, %c0_i32_0, %arg1 : i32, i32, i32, i32
  }
}

</mosaic_0001>

<bundles_post_ra>
// kernel: tpu_custom_call.1
= control target key start
LH: loop header
LB: loop body
LE: loop exit
PB: predicated region body
PF: predicated region fallthrough
CT: control target
= control target key end

     0   :  { %s2726_s0 = inlined_call_operand.hbm [shape: f32[2,16,16,256], index: 0, kind: input, shape index: {}]   ;;  %s2727_s1 = inlined_call_operand.hbm [shape: f32[9,256], index: 1, kind: input, shape index: {}]   ;;  %s2728_s2 = inlined_call_operand.vmem [shape: f32[1,256], index: 2, kind: input, shape index: {}]   ;;  %s2729_s3 = inlined_call_operand.hbm [shape: f32[2,16,16,256], index: 3, kind: output, shape index: {}]  }
   0x1   :  { %2742 = sst [smem:[#allocation16_spill]] %s2729_s3 }
   0x2   :  { %8 = vsyncpa [#allocation4], 0 }
   0x3   :  { %10 = vsyncpa [#allocation4 + $0x1], 0 }
   0x4   :  { %11 = vsyncpa [#allocation7], 0 }
   0x5   :  { %13 = vsyncpa [#allocation7 + $0x1], 0 }
   0x6   :  { %14 = vsyncpa [#allocation5], 0 }
   0x7   :  { %16 = vsyncpa [#allocation5 + $0x1], 0  ;;  %s1810_s12 = smov 0   ;;  %s1812_s13 = smov 0  }
   0x8   :  { %s1814_s14 = smov 0   ;;  %s1816_s15 = smov 0  }
   0x9   :  { %s1818_s16 = smov 0   ;;  %s1820_s17 = smov 0  }
   0xa   :  { %s1822_s18 = smov 0   ;;  %s1824_s19 = smov 0  }
   0xb   :  { %s1826_s20 = smov 0   ;;  %s1828_s21 = smov 0  }
   0xc   :  { %s1830_s22 = smov 0  }
   0xd LB: > { %2743 = sst [smem:[#allocation12_spill]] %s1750_s15  ;;  %s1455_s23 = sadd.s32 4294967295, %s1778_s22   ;;  %s1778_s22 = sphi %s1830_s22, %s22_s22   ;;  %s1774_s21 = sphi %s1828_s21, %s2782_s21   ;;  %s1770_s20 = sphi %s1826_s20, %s2781_s20   ;;  %s1766_s19 = sphi %s1824_s19, %s2780_s19   ;;  %s1762_s18 = sphi %s1822_s18, %s2779_s18   ;;  %s1758_s17 = sphi %s1820_s17, %s2778_s17   ;;  %s1754_s16 = sphi %s1818_s16, %s2777_s16   ;;  %s1750_s15 = sphi %s1816_s15, %s2776_s15   ;;  %s1746_s14 = sphi %s1814_s14, %s2775_s14   ;;  %s1742_s13 = sphi %s1812_s13, %s2774_s13   ;;  %s1738_s12 = sphi %s1810_s12, %s2773_s12  }
   0xe   : > { %2744 = sst [smem:[#allocation13_spill]] %s1766_s19  ;;  %s1456_s24 = sadd.s32 4294967294, %s1778_s22  }
   0xf   : > { %s31_s25 = sadd.s32 1, %s1770_s20  ;;  %s34_s26 = sadd.s32 1, %s1774_s21 }
  0x10   : > { %p32_p0 = scmp.ge.s32.totalorder %s31_s25, 2  ;;  %s43_s27 = sadd.s32 1, %s1758_s17 }
  0x11   : > { %p50_p1 = scmp.ne.s32.totalorder %s1758_s17, %s1754_s16  ;;  %p2735_p2 = scmp.eq.s32.totalorder %s1778_s22, 0 }
  0x12   : > { %s2784_s25 = smov (%p32_p0, %s31_s25), 0  ;;  %s2786_s26 = smov (!%p32_p0, %s34_s26), %s1774_s21 }
  0x13   : > { %2745 = sst [smem:[#allocation14_spill]] %s2784_s25  ;;  %s1878_s28 = ssub.s32 %s1770_s20, %s2784_s25 }
  0x14   : > { %p1885_p3 = por %p2735_p2, %p50_p1  ;;  %p36_p4 = scmp.ge.s32.totalorder %s2786_s26, 2 }
  0x15   : > { %p56_p5 = scmp.ne.s32.totalorder %s1754_s16, %s1750_s15  ;;  %p1891_p6 = scmp.eq.s32.totalorder %s1455_s23, 0 }
  0x16   : > { %s2788_s26 = smov (%p36_p4, %s2786_s26), 0  ;;  %p134_p9 = scmp.eq.s32.totalorder %s1455_s23, 3 }
  0x17   : > { %2748 = sst [smem:[#allocation15_spill]] %s2788_s26  ;;  %p1900_p8 = por %p1891_p6, %p56_p5 }
  0x18   : > { %s38_s5 = ssub.s32 %s1774_s21, %s2788_s26  ;;  %p140_p10 = scmp.eq.s32.totalorder %s1456_s24, 3 }
  0x19   : > { %s2749_s4 = scalar_select %p1900_p8, 1, 0 }
  0x1a   : > { %s40_s6 = sor.u32 %s1878_s28, %s38_s5  ;;  %p1910_p11 = por %p134_p9, %p50_p1 }
  0x1b   : > { %p41_p12 = scmp.eq.s32.totalorder %s40_s6, 0  ;;  %p1914_p13 = por %p140_p10, %p56_p5 }
  0x1c   : > { %s2750_s7 = scalar_select %p1910_p11, 1, 0 }
  0x1d   : > { %s2751_s8 = scalar_select %p1914_p13, 1, 0 }
  0x1e   : > { %p2734_p0 = scmp.lt.s32.totalorder %s1778_s22, 4  ;;  %s160_s10 = sand.u32 1, %s1758_s17  }
  0x1f   : > { %s1920_s9 = scalar_select %p41_p12, %s1758_s17, %s43_s27  }
  0x20   : > { %s1460_s11 = sshll.u32 %s1774_s21, 6  ;;  %s1459_s23 = sshll.u32 %s160_s10, 8 }
  0x21   : > { %s169_s24 = sadd.s32 %s1770_s20, %s1460_s11  ;;  %s164_s5 = scalar_lea.vmem [#allocation3], %s1459_s23 }
  0x22   : > { %s1461_s26 = sshll.u32 %s169_s24, 7  ;;  %s172_s25 = sshll.u32 %s164_s5, 4  ;;  %s1930_s25 = int_to_ptr.vmem [resolvable:$true] %s172_s25 }
  0x23   : > { %s1928_s19 = scalar_lea.hbm %s2726_s0, %s1461_s26  ;;  %p1936_p1 = pnand %p2734_p0, %p1885_p3 }
  0x24   : > { %s1941_s6 = scalar_lea.sflag [#allocation4], %s160_s10  ;;  %s1592_s3 = scalar_lea.hbm %s1928_s19, 4096 }
  0x25   : > { %p1593_p5 = scmp.ne.s32.totalorder %s1928_s19, %s1592_s3  ;;  %p1594_p9 = pneg %p1936_p1 }
  0x26   : > { %s1597_s29 = scalar_lea.hbm %s2726_s0, 16384  ;;  %p1598_p3 = scmp.lt.u32.totalorder %s1928_s19, %s2726_s0 }
  0x27   : > { %p1595_p10 = pnand %p1594_p9, %p1593_p5  ;;  %p1599_p0 = scmp.lt.u32.totalorder %s1597_s29, %s1592_s3 }
  0x28   : > { %p1601_p7 = scmp.lt.u32.totalorder %s1592_s3, %s1928_s19 }
  0x29   : > { %p1596_p12 = pneg %p1595_p10  ;;  %p1600_p2 = por %p1599_p0, %p1598_p3 }
  0x2b   : > { %p1602_p4 = por %p1601_p7, %p1600_p2 }
  0x2d   : > { %p1603_p13 = pnand %p1602_p4, %p1596_p12 }
  0x2f   : > { %1606 = shalt.err (!%p1603_p13)
}
  0x30   : > { %s1607_s10 = scalar_lea.vmem %s1930_s25, 4096  ;;  %s1780_s24 = smov [#allocation3]  }
  0x31   : > { %p1608_p5 = scmp.ne.s32.totalorder %s1930_s25, %s1607_s10  ;;  %s1612_s5 = sshll.u32 %s1780_s24, 4  ;;  %s1613_s5 = int_to_ptr.vmem [resolvable:$false] %s1612_s5 }
  0x32   : > { %s1614_s15 = scalar_lea.vmem %s1613_s5, 8192  ;;  %p1615_p8 = scmp.lt.s32.totalorder %s1930_s25, %s1613_s5 }
  0x33   : > { %p1610_p10 = pnand %p1608_p5, %p1594_p9  ;;  %p1616_p0 = scmp.lt.s32.totalorder %s1614_s15, %s1607_s10 }
  0x35   : > { %p1611_p11 = pneg %p1610_p10  ;;  %p1617_p3 = por %p1616_p0, %p1615_p8 }
  0x37   : > { %p1618_p2 = pnand %p1617_p3, %p1611_p11 }
  0x39   : > { %1621 = shalt.err (!%p1618_p2)
}
  0x3a   : > { %s2738_s3 = smov 256   ;;  %s2739_s26 = smov 128  }
  0x3b   : > { %s2740_s29 = smov 8   ;;  %p206_p7 = scmp.lt.s32.totalorder %s1778_s22, 5 }
  0x3c   : > { %1484 = dma.hbm_to_vmem [thread:$0]  (!%p1936_p1), %s1928_s19, 4096, %s1930_s25, %s1941_s6, %s2738_s3, %s2739_s26, %s2740_s29  }
  0x3d   : > { %p2753_p8 = scmp.ge.s32.totalorder %s1778_s22, 1  ;;  %s69_s23 = sadd.s32 1, %s1746_s14 }
  0x3e   : > { %p76_p13 = scmp.ne.s32.totalorder %s1746_s14, %s1742_s13  ;;  %p2755_p4 = scmp.eq.s32.totalorder %s1878_s28, 0 }
  0x3f   : > { %p1975_p11 = pnand %p2753_p8, %p206_p7  ;;  %p2756_p9 = scmp.eq.s32.totalorder %s1778_s22, 0 }
  0x40   : > { %s1985_s10 = scalar_select %p2755_p4, %s1746_s14, %s69_s23  }
  0x41   : > { %p78_p12 = por %p76_p13, %p2756_p9  ;;  %p82_p5 = scmp.ne.s32.totalorder %s1742_s13, %s1738_s12 }
  0x42   : > { %s182_s24 = sand.u32 1, %s1746_s14   ;;  %s1463_s27 = sshll.u32 %s1770_s20, 7 }
  0x43   : > { %p1995_p10 = por %p82_p5, %p1891_p6  ;;  %s1462_s19 = sshll.u32 %s182_s24, 4 }
  0x44   : > { %s2002_s15 = scalar_lea.hbm %s2727_s1, %s1463_s27  ;;  %p2758_p1 = scmp.lt.s32.totalorder %s1778_s22, 4 }
  0x45   : > { %s2757_s5 = scalar_select %p1995_p10, 1, 0 }
  0x46   : > { %p2006_p0 = pnand %p2758_p1, %p78_p12  ;;  %s186_s28 = scalar_lea.vmem [#allocation6], %s1462_s19 }
  0x47   : > { %s192_s30 = sshll.u32 %s186_s28, 4  ;;  %s2012_s23 = scalar_lea.sflag [#allocation7], %s182_s24  ;;  %s2010_s30 = int_to_ptr.vmem [resolvable:$true] %s192_s30 }
  0x48   : > { %s1622_s25 = scalar_lea.hbm %s2002_s15, 256  ;;  %p1624_p3 = pneg %p2006_p0 }
  0x49   : > { %p1623_p6 = scmp.ne.s32.totalorder %s2002_s15, %s1622_s25  ;;  %s1627_s3 = scalar_lea.hbm %s2727_s1, 512 }
  0x4a   : > { %p1628_p8 = scmp.lt.u32.totalorder %s2002_s15, %s2727_s1  ;;  %p1629_p13 = scmp.lt.u32.totalorder %s1627_s3, %s1622_s25 }
  0x4b   : > { %p1625_p2 = pnand %p1624_p3, %p1623_p6  ;;  %p1631_p9 = scmp.lt.u32.totalorder %s1622_s25, %s2002_s15 }
  0x4c   : > { %p1630_p4 = por %p1629_p13, %p1628_p8 }
  0x4d   : > { %p1626_p7 = pneg %p1625_p2 }
  0x4e   : > { %p1632_p12 = por %p1631_p9, %p1630_p4 }
  0x50   : > { %p1633_p5 = pnand %p1632_p12, %p1626_p7 }
  0x52   : > { %1636 = shalt.err (!%p1633_p5)
}
  0x53   : > { %s1637_s24 = scalar_lea.vmem %s2010_s30, 256  ;;  %s1784_s19 = smov [#allocation6]  }
  0x54   : > { %p1638_p1 = scmp.ne.s32.totalorder %s2010_s30, %s1637_s24  ;;  %s1642_s28 = sshll.u32 %s1784_s19, 4  ;;  %s1643_s28 = int_to_ptr.vmem [resolvable:$false] %s1642_s28 }
  0x55   : > { %s1644_s26 = scalar_lea.vmem %s1643_s28, 512  ;;  %p1645_p10 = scmp.lt.s32.totalorder %s2010_s30, %s1643_s28 }
  0x56   : > { %p1640_p6 = pnand %p1638_p1, %p1624_p3  ;;  %p1646_p8 = scmp.lt.s32.totalorder %s1644_s26, %s1637_s24 }
  0x58   : > { %p1641_p2 = pneg %p1640_p6  ;;  %p1647_p13 = por %p1646_p8, %p1645_p10 }
  0x5a   : > { %p1648_p4 = pnand %p1647_p13, %p1641_p2 }
  0x5c   : > { %1651 = shalt.err (!%p1648_p4)
}
  0x5d   : > { %s2760_s3 = smov 8   ;;  %s2761_s29 = smov 128  }
  0x5e   : > { %s2762_s25 = smov 256   ;;  %210 = sbr.rel (%p1975_p11) target bundleno = 311 (0x137), region = 32 }
  0x5f   : > { %1487 = dma.hbm_to_vmem [thread:$0]  (!%p2006_p0), %s2002_s15, 256, %s2010_s30, %s2012_s23, %s2762_s25, %s2761_s29, %s2760_s3  }
  0x60   : > { %s2046_s27 = sand.u32 (!%p1975_p11), 1, %s1754_s16   ;;  %p2763_p10 = scmp.ne.s32.totalorder (!%p1975_p11), %s2749_s4, 0 }
  0x61   : > { %s1465_s6 = sshll.u32 (!%p1975_p11), %s2046_s27, 8  ;;  %s213_s24 = scalar_lea.sflag (!%p1975_p11), [#allocation4], %s2046_s27 }
  0x62   : > { %s2052_s12 = scalar_lea.vmem (!%p1975_p11), [#allocation3], %s1465_s6 }
  0x65   : > { %1725 = dma.done.wait (%p2763_p10), %s213_s24, 4096  }
  0x66   : > { %1727 = vsyncadd (%p2763_p10), %s213_s24, 4294963200  ;;  %s221_s11 = sand.u32 1, %s1742_s13   ;;  %p2764_p11 = scmp.ne.s32.totalorder %s2757_s5, 0 }
  0x67   : > { %s1466_s15 = sshll.u32 %s221_s11, 4  ;;  %s222_s30 = scalar_lea.sflag [#allocation7], %s221_s11 }
  0x68   : > { %s2059_s23 = scalar_lea.vmem [#allocation6], %s1466_s15 }
  0x69   : > { %1729 = dma.done.wait (%p2764_p11), %s222_s30, 256  }
  0x6a   : > { %1731 = vsyncadd (%p2764_p11), %s222_s30, 4294967040  ;;  %v1785_v0 = vmov 0.0   ;;  %v413_v1 = vlaneseq  ;;  %v2066_v2 = vld [vmem:[%s2052_s12] sm:$0xff]  ;;  %v2069_v3 = vld [vmem:[%s2052_s12 + $0x8] sm:$0xff]  ;;  %p256_p0 = scmp.lt.s32.totalorder %s1762_s18, 1  ;;  %s2280_s26 = scalar_lea.vmem [#allocation8], %s1465_s6 }
  0x6b   : > { %259 = vst [vmem:[#allocation2] sm:$0xff] %v1785_v0  ;;  %260 = vst [vmem:[#allocation2 + $0x8] sm:$0xff] %v1785_v0  ;;  %v2072_v4 = vld [vmem:[%s2052_s12 + $0x10] sm:$0xff]  ;;  %v2078_v5 = vld [vmem:[%s2052_s12 + $0x18] sm:$0xff]  ;;  %s2765_s3 = sld [smem:[#allocation13_spill]]  ;;  %s1335_s24 = sshll.u32 %s2280_s26, 4  ;;  %s2661_s24 = int_to_ptr.vmem [resolvable:$true] %s1335_s24 }
  0x6c   : > { %261 = vst [vmem:[#allocation2 + $0x10] sm:$0x3] %v1785_v0  ;;  %262 = vst [vmem:[#allocation2 + $0x18] sm:$0xff] %v1785_v0  ;;  %v2081_v6 = vld [vmem:[%s2052_s12 + $0x20] sm:$0xff]  ;;  %v2084_v7 = vld [vmem:[%s2052_s12 + $0x28] sm:$0xff]  ;;  %v2098_v11 = vshrl.u32 %v413_v1, 7 }
  0x6d   : > { %263 = vst [vmem:[#allocation2 + $0x20] sm:$0xff] %v1785_v0  ;;  %264 = vst [vmem:[#allocation2 + $0x28] sm:$0x3] %v1785_v0  ;;  %v2090_v8 = vld [vmem:[%s2052_s12 + $0x30] sm:$0xff]  ;;  %v2093_v9 = vld [vmem:[%s2052_s12 + $0x38] sm:$0xff]  ;;  %s257_s4 = scalar_select %p256_p0, %s1762_s18, 1 }
  0x6e   : > { %265 = vst [vmem:[#allocation2 + $0x30] sm:$0xff] %v1785_v0  ;;  %266 = vst [vmem:[#allocation2 + $0x38] sm:$0xff] %v1785_v0  ;;  %v2096_v10 = vld [vmem:[%s2052_s12 + $0x40] sm:$0xff]  ;;  %v2104_v12 = vld [vmem:[%s2052_s12 + $0x48] sm:$0xff]  ;;  %v415_v24 = vsub.s32 0, %v2098_v11  ;;  %v483_v28 = vsub.s32 1, %v2098_v11 }
  0x6f   : > { %267 = vst [vmem:[#allocation2 + $0x40] sm:$0x3] %v1785_v0  ;;  %268 = vst [vmem:[#allocation2 + $0x48] sm:$0xff] %v1785_v0  ;;  %v2107_v13 = vld [vmem:[%s2052_s12 + $0x50] sm:$0xff]  ;;  %v2110_v14 = vld [vmem:[%s2052_s12 + $0x58] sm:$0xff]  ;;  %v583_v29 = vsub.s32 2, %v2098_v11  ;;  %s2245_s28 = scalar_lea.vmem %s2728_s2, %s257_s4 }
  0x70   : > { %269 = vst [vmem:[#allocation2 + $0x50] sm:$0xff] %v1785_v0  ;;  %270 = vst [vmem:[#allocation2 + $0x58] sm:$0x3] %v1785_v0  ;;  %v2116_v15 = vld [vmem:[%s2052_s12 + $0x60] sm:$0xff]  ;;  %v2119_v16 = vld [vmem:[%s2052_s12 + $0x68] sm:$0xff]  ;;  %v683_v30 = vsub.s32 3, %v2098_v11 }
  0x71   : > { %271 = vst [vmem:[#allocation2 + $0x60] sm:$0xff] %v1785_v0  ;;  %272 = vst [vmem:[#allocation2 + $0x68] sm:$0xff] %v1785_v0  ;;  %v2122_v17 = vld [vmem:[%s2052_s12 + $0x70] sm:$0xff]  ;;  %v2128_v18 = vld [vmem:[%s2052_s12 + $0x78] sm:$0xff]  ;;  %v883_v34 = vsub.s32 5, %v2098_v11  ;;  %v984_v35 = vsub.s32 6, %v2098_v11 }
  0x72   : > { %273 = vst [vmem:[#allocation2 + $0x70] sm:$0x3] %v1785_v0  ;;  %274 = vst [vmem:[#allocation2 + $0x78] sm:$0xff] %v1785_v0  ;;  %v2131_v19 = vld [vmem:[%s2052_s12 + $0x80] sm:$0xff]  ;;  %v2134_v20 = vld [vmem:[%s2052_s12 + $0x88] sm:$0xff]  ;;  %v783_v42 = vsub.s32 4, %v2098_v11 }
  0x73   : > { %275 = vst [vmem:[#allocation2 + $0x80] sm:$0xff] %v1785_v0  ;;  %276 = vst [vmem:[#allocation2 + $0x88] sm:$0x3] %v1785_v0  ;;  %v331_v21 = vld [vmem:[%s2052_s12 + $0x90] sm:$0xff]  ;;  %v332_v22 = vld [vmem:[%s2052_s12 + $0x98] sm:$0xff]  ;;  %v1084_v43 = vsub.s32 7, %v2098_v11 }
  0x74   : > { %277 = vst [vmem:[#allocation2 + $0x90] sm:$0xff] %v1785_v0  ;;  %278 = vst [vmem:[#allocation2 + $0x98] sm:$0xff] %v1785_v0  ;;  %v333_v23 = vld [vmem:[%s2052_s12 + $0xa0] sm:$0xff]  ;;  %v334_v25 = vld [vmem:[%s2052_s12 + $0xa8] sm:$0xff]  ;;  %s1471_s29 = sshll.u32 %s2765_s3, 6  ;;  %s2766_s15 = sld [smem:[#allocation16_spill]] }
  0x75   : > { %279 = vst [vmem:[#allocation2 + $0xa0] sm:$0x3] %v1785_v0  ;;  %280 = vst [vmem:[#allocation2 + $0xa8] sm:$0xff] %v1785_v0  ;;  %v335_v26 = vld [vmem:[%s2052_s12 + $0xb0] sm:$0xff]  ;;  %v336_v27 = vld [vmem:[%s2052_s12 + $0xb8] sm:$0xff]  ;;  %s1332_s25 = sadd.s32 %s1762_s18, %s1471_s29  ;;  %s1321_s18 = scalar_lea.sflag [#allocation5], %s2046_s27 }
  0x76   : > { %281 = vst [vmem:[#allocation2 + $0xb0] sm:$0xff] %v1785_v0  ;;  %282 = vst [vmem:[#allocation2 + $0xb8] sm:$0x3] %v1785_v0  ;;  %v337_v31 = vld [vmem:[%s2052_s12 + $0xc0] sm:$0xff]  ;;  %v338_v32 = vld [vmem:[%s2052_s12 + $0xc8] sm:$0xff]  ;;  %s1472_s6 = sshll.u32 %s1332_s25, 7 }
  0x77   : > { %283 = vst [vmem:[#allocation2 + $0xc0] sm:$0xff] %v1785_v0  ;;  %284 = vst [vmem:[#allocation2 + $0xc8] sm:$0xff] %v1785_v0  ;;  %v339_v33 = vld [vmem:[%s2052_s12 + $0xd0] sm:$0xff]  ;;  %v340_v36 = vld [vmem:[%s2052_s12 + $0xd8] sm:$0xff]  ;;  %s1652_s4 = scalar_lea.vmem %s2661_s24, 4096  ;;  %p2768_p7 = scmp.ne.s32.totalorder %s2750_s7, 0 }
  0x78   : > { %285 = vst [vmem:[#allocation2 + $0xd0] sm:$0x3] %v1785_v0  ;;  %286 = vst [vmem:[#allocation2 + $0xd8] sm:$0xff] %v1785_v0  ;;  %v341_v37 = vld [vmem:[%s2052_s12 + $0xe0] sm:$0xff]  ;;  %v342_v38 = vld [vmem:[%s2052_s12 + $0xe8] sm:$0xff]  ;;  %p1653_p3 = scmp.ne.s32.totalorder %s2661_s24, %s1652_s4  ;;  %s1786_s5 = smov [#allocation8]  }
  0x79   : > { %287 = vst [vmem:[#allocation2 + $0xe0] sm:$0xff] %v1785_v0  ;;  %288 = vst [vmem:[#allocation2 + $0xe8] sm:$0x3] %v1785_v0  ;;  %v343_v39 = vld [vmem:[%s2052_s12 + $0xf0] sm:$0xff]  ;;  %v344_v40 = vld [vmem:[%s2052_s12 + $0xf8] sm:$0xff]  ;;  %s1656_s19 = sshll.u32 %s1786_s5, 4  ;;  %s1657_s19 = int_to_ptr.vmem [resolvable:$false] %s1656_s19 }
  0x7a   : > { %289 = vst [vmem:[#allocation2 + $0xf0] sm:$0xff] %v1785_v0  ;;  %290 = vst [vmem:[#allocation2 + $0xf8] sm:$0xff] %v1785_v0  ;;  %v378_v41 = vld [vmem:[%s2059_s23] sm:$0xff]  ;;  %v2171_v49 = vld [vmem:[%s2059_s23 + $0x8] ss:$0 sm:$0xff]  ;;  %s2767_s30 = smov %s2766_s15  ;;  %p1654_p9 = pnand %p1653_p3, %p2768_p7 }
  0x7b   : > { %291 = vst [vmem:[#allocation2 + $0x100] sm:$0x3] %v1785_v0  ;;  %292 = vst [vmem:[#allocation2 + $0x108] sm:$0xff] %v1785_v0  ;;  %v2162_v44 = vrot.slane %v378_v41, %v415_v24  ;;  %v449_v45 = vld [vmem:[#allocation2 + $0x1] sm:$0xff]  ;;  %v2164_v46 = vrot.slane %v378_v41, %v483_v28  ;;  %v2166_v47 = vrot.slane %v378_v41, %v583_v29  ;;  %v450_v59 = vld [vmem:[#allocation2 + $0x9] sm:$0xff]  ;;  %p1659_p5 = scmp.lt.s32.totalorder %s2661_s24, %s1657_s19 }
  0x7c   : > { %293 = vst [vmem:[#allocation2 + $0x110] sm:$0xff] %v1785_v0  ;;  %294 = vst [vmem:[#allocation2 + $0x118] sm:$0x3] %v1785_v0  ;;  %v2168_v48 = vrot.slane %v378_v41, %v683_v30  ;;  %v549_v50 = vld [vmem:[#allocation2 + $0x2] sm:$0xff]  ;;  %v2173_v52 = vrot.slane %v378_v41, %v883_v34  ;;  %v2175_v53 = vrot.slane %v378_v41, %v984_v35  ;;  %v550_v63 = vld [vmem:[#allocation2 + $0xa] sm:$0xff]  ;;  %p1655_p12 = pneg %p1654_p9 }
  0x7d   : > { %295 = vst [vmem:[#allocation2 + $0x120] sm:$0xff] %v1785_v0  ;;  %296 = vst [vmem:[#allocation2 + $0x128] sm:$0xff] %v1785_v0  ;;  %v417_v54 = vmul.f32 0.0, %v2162_v44  ;;  %v485_v55 = vmul.f32 %v2164_v46, %v449_v45  ;;  %v585_v56 = vmul.f32 %v2166_v47, %v549_v50  ;;  %v2180_v60 = vrot.slane %v378_v41, %v783_v42 }
  0x7e   : > { %297 = vst [vmem:[#allocation2 + $0x130] sm:$0x3] %v1785_v0  ;;  %298 = vst [vmem:[#allocation2 + $0x138] sm:$0xff] %v1785_v0  ;;  %v2182_v61 = vrot.slane %v378_v41, %v1084_v43 }
  0x7f   : > { %299 = vst [vmem:[#allocation2 + $0x140] sm:$0xff] %v1785_v0  ;;  %300 = vst [vmem:[#allocation2 + $0x148] sm:$0x3] %v1785_v0  ;;  %v517_v1 = vadd.f32 %v485_v55, %v417_v54  ;;  %v785_v24 = vmul.f32 %v2180_v60, %v2066_v2  ;;  %v786_v34 = vmul.f32 %v2180_v60, %v2069_v3 }
  0x80   : > { %301 = vst [vmem:[#allocation2 + $0x150] sm:$0xff] %v1785_v0  ;;  %302 = vst [vmem:[#allocation2 + $0x158] sm:$0xff] %v1785_v0  ;;  %v1087_v41 = vmul.f32 %v2182_v61, %v2078_v5 }
  0x81   : > { %303 = vst [vmem:[#allocation2 + $0x160] sm:$0x3] %v1785_v0  ;;  %304 = vst [vmem:[#allocation2 + $0x168] sm:$0xff] %v1785_v0  ;;  %v617_v29 = vadd.f32 %v585_v56, %v517_v1  ;;  %v488_v56 = vmul.f32 %v2164_v46, %v2069_v3 }
  0x82   : > { %305 = vst [vmem:[#allocation2 + $0x170] sm:$0xff] %v1785_v0  ;;  %306 = vst [vmem:[#allocation2 + $0x178] sm:$0x3] %v1785_v0 }
  0x83   : > { %307 = vst [vmem:[#allocation2 + $0x180] sm:$0xff] %v1785_v0  ;;  %308 = vst [vmem:[#allocation2 + $0x188] sm:$0xff] %v1785_v0 }
  0x84   : > { %309 = vst [vmem:[#allocation2 + $0x190] sm:$0x3] %v1785_v0  ;;  %310 = vst [vmem:[#allocation2 + $0x198] sm:$0xff] %v1785_v0 }
  0x85   : > { %311 = vst [vmem:[#allocation2 + $0x1a0] sm:$0xff] %v1785_v0  ;;  %312 = vst [vmem:[#allocation2 + $0x1a8] sm:$0x3] %v1785_v0 }
  0x86   : > { %346 = vst [vmem:[#allocation2 + $0x19] sm:$0xff] %v2066_v2  ;;  %347 = vst [vmem:[#allocation2 + $0x21] sm:$0xff] %v2069_v3  ;;  %v1088_v3 = vmul.f32 %v2182_v61, %v2081_v6 }
  0x87   : > { %348 = vst [vmem:[#allocation2 + $0x31] sm:$0xff] %v2072_v4  ;;  %349 = vst [vmem:[#allocation2 + $0x39] sm:$0xff] %v2078_v5 }
  0x88   : > { %350 = vst [vmem:[#allocation2 + $0x49] sm:$0xff] %v2081_v6  ;;  %351 = vst [vmem:[#allocation2 + $0x51] sm:$0xff] %v2084_v7 }
  0x89   : > { %352 = vst [vmem:[#allocation2 + $0x61] sm:$0xff] %v2090_v8  ;;  %353 = vst [vmem:[#allocation2 + $0x69] sm:$0xff] %v2093_v9 }
  0x8a   : > { %354 = vst [vmem:[#allocation2 + $0x79] sm:$0xff] %v2096_v10  ;;  %355 = vst [vmem:[#allocation2 + $0x81] sm:$0xff] %v2104_v12 }
  0x8b   : > { %356 = vst [vmem:[#allocation2 + $0x91] sm:$0xff] %v2107_v13  ;;  %357 = vst [vmem:[#allocation2 + $0x99] sm:$0xff] %v2110_v14 }
  0x8c   : > { %358 = vst [vmem:[#allocation2 + $0xa9] sm:$0xff] %v2116_v15  ;;  %359 = vst [vmem:[#allocation2 + $0xb1] sm:$0xff] %v2119_v16 }
  0x8d   : > { %360 = vst [vmem:[#allocation2 + $0xc1] sm:$0xff] %v2122_v17  ;;  %361 = vst [vmem:[#allocation2 + $0xc9] sm:$0xff] %v2128_v18  ;;  %v649_v51 = vld [vmem:[#allocation2 + $0x18] sm:$0xff]  ;;  %v650_v0 = vld [vmem:[#allocation2 + $0x20] sm:$0xff] }
  0x8e   : > { %362 = vst [vmem:[#allocation2 + $0xd9] sm:$0xff] %v2131_v19  ;;  %363 = vst [vmem:[#allocation2 + $0xe1] sm:$0xff] %v2134_v20  ;;  %v849_v57 = vld [vmem:[#allocation2 + $0x1a] sm:$0xff]  ;;  %v950_v58 = vld [vmem:[#allocation2 + $0x30] sm:$0xff]  ;;  %v685_v11 = vmul.f32 %v2168_v48, %v649_v51  ;;  %v420_v55 = vmul.f32 %v650_v0, %v2162_v44 }
  0x8f   : > { %364 = vst [vmem:[#allocation2 + $0xf1] sm:$0xff] %v331_v21  ;;  %365 = vst [vmem:[#allocation2 + $0xf9] sm:$0xff] %v332_v22  ;;  %v2184_v62 = vld [vmem:[#allocation2 + $0x32] sm:$0xff]  ;;  %v486_v21 = vmul.f32 %v2164_v46, %v450_v59  ;;  %v586_v22 = vmul.f32 %v2166_v47, %v550_v63  ;;  %v2213_v42 = vld [vmem:[#allocation2 + $0x48] sm:$0xff]  ;;  %v587_v50 = vmul.f32 %v849_v57, %v2166_v47 }
  0x90   : > { %366 = vst [vmem:[#allocation2 + $0x109] sm:$0xff] %v333_v23  ;;  %367 = vst [vmem:[#allocation2 + $0x111] sm:$0xff] %v334_v25  ;;  %v850_v23 = vld [vmem:[#allocation2 + $0x22] sm:$0xff]  ;;  %v885_v25 = vmul.f32 %v2173_v52, %v849_v57  ;;  %v2195_v28 = vld [vmem:[#allocation2 + $0x38] sm:$0xff]  ;;  %v1186_v30 = vmul.f32 %v2171_v49, %v2184_v62  ;;  %v787_v63 = vmul.f32 %v2180_v60, %v2072_v4 }
  0x91   : > { %368 = vst [vmem:[#allocation2 + $0x121] sm:$0xff] %v335_v26  ;;  %369 = vst [vmem:[#allocation2 + $0x129] sm:$0xff] %v336_v27  ;;  %v986_v26 = vmul.f32 %v2175_v53, %v950_v58  ;;  %v1086_v27 = vmul.f32 %v2182_v61, %v2072_v4  ;;  %v886_v35 = vmul.f32 %v2173_v52, %v850_v23 }
  0x92   : > { %370 = vst [vmem:[#allocation2 + $0x139] sm:$0xff] %v337_v31  ;;  %371 = vst [vmem:[#allocation2 + $0x141] sm:$0xff] %v338_v32  ;;  %v518_v31 = vadd.f32 %v486_v21, %v417_v54  ;;  %v686_v32 = vmul.f32 %v2168_v48, %v650_v0  ;;  %v887_v1 = vmul.f32 %v2184_v62, %v2173_v52 }
  0x93   : > { %372 = vst [vmem:[#allocation2 + $0x151] sm:$0xff] %v339_v33  ;;  %373 = vst [vmem:[#allocation2 + $0x159] sm:$0xff] %v340_v36  ;;  %v2201_v33 = vld [vmem:[#allocation2 + $0x3a] sm:$0xff]  ;;  %v419_v36 = vmul.f32 %v649_v51, %v2162_v44  ;;  %v687_v51 = vmul.f32 %v950_v58, %v2168_v48  ;;  %v988_v57 = vmul.f32 %v2175_v53, %v2213_v42 }
  0x94   : > { %374 = vst [vmem:[#allocation2 + $0x169] sm:$0xff] %v341_v37  ;;  %375 = vst [vmem:[#allocation2 + $0x171] sm:$0xff] %v342_v38  ;;  %v487_v37 = vmul.f32 %v2164_v46, %v2066_v2  ;;  %v717_v38 = vadd.f32 %v685_v11, %v617_v29  ;;  %v1187_v43 = vmul.f32 %v2171_v49, %v2201_v33 }
  0x95   : > { %376 = vst [vmem:[#allocation2 + $0x181] sm:$0xff] %v343_v39  ;;  %377 = vst [vmem:[#allocation2 + $0x189] sm:$0xff] %v344_v40  ;;  %v618_v39 = vadd.f32 %v586_v22, %v518_v31  ;;  %v987_v40 = vmul.f32 %v2175_v53, %v2195_v28  ;;  %v2231_v22 = vld [vmem:[#allocation2 + $0x4a] sm:$0xff]  ;;  %v588_v0 = vmul.f32 %v850_v23, %v2166_v47 }
  0x96   : > { %v519_v45 = vadd.f32 %v487_v37, %v419_v36  ;;  %v817_v2 = vadd.f32 %v785_v24, %v717_v38  ;;  %v520_v24 = vadd.f32 %v488_v56, %v420_v55  ;;  %v688_v31 = vmul.f32 %v2195_v28, %v2168_v48  ;;  %v2240_v36 = vld [vmem:[#allocation2 + $0x50] sm:$0xff] }
  0x97   : > { %v718_v54 = vadd.f32 %v686_v32, %v618_v39  ;;  %v788_v32 = vmul.f32 %v2180_v60, %v2078_v5  ;;  %v421_v37 = vmul.f32 %v950_v58, %v2162_v44  ;;  %v1188_v39 = vmul.f32 %v2171_v49, %v2231_v22 }
  0x98   : > { %v619_v59 = vadd.f32 %v587_v50, %v519_v45  ;;  %v917_v11 = vadd.f32 %v885_v25, %v817_v2  ;;  %v888_v45 = vmul.f32 %v2201_v33, %v2173_v52  ;;  %v489_v50 = vmul.f32 %v2164_v46, %v2072_v4  ;;  %v2263_v4 = vld [vmem:[#allocation2 + $0x52] sm:$0xff] }
  0x99   : > { %v818_v21 = vadd.f32 %v786_v34, %v718_v54  ;;  %v620_v34 = vadd.f32 %v588_v0, %v520_v24  ;;  %v1089_v58 = vmul.f32 %v2182_v61, %v2084_v7  ;;  %v422_v0 = vmul.f32 %v2195_v28, %v2162_v44 }
  0x9a   : > { %v719_v29 = vadd.f32 %v687_v51, %v619_v59  ;;  %v1018_v25 = vadd.f32 %v986_v26, %v917_v11  ;;  %v989_v26 = vmul.f32 %v2175_v53, %v2240_v36  ;;  %v521_v56 = vadd.f32 %v489_v50, %v421_v37 }
  0x9b   : > { %v918_v23 = vadd.f32 %v886_v35, %v818_v21  ;;  %v720_v54 = vadd.f32 %v688_v31, %v620_v34  ;;  %v2257_v35 = vld [vmem:[%s2245_s28] ss:$0 sm:$0xff]  ;;  %v589_v59 = vmul.f32 %v2184_v62, %v2166_v47  ;;  %v490_v31 = vmul.f32 %v2164_v46, %v2078_v5 }
  0x9c   : > { %v819_v38 = vadd.f32 %v787_v63, %v719_v29  ;;  %v1118_v51 = vadd.f32 %v1086_v27, %v1018_v25  ;;  %v689_v27 = vmul.f32 %v2213_v42, %v2168_v48  ;;  %v1189_v25 = vmul.f32 %v2171_v49, %v2263_v4 }
  0x9d   : > { %v1019_v2 = vadd.f32 %v987_v40, %v918_v23  ;;  %v820_v21 = vadd.f32 %v788_v32, %v720_v54  ;;  %v621_v24 = vadd.f32 %v589_v59, %v521_v56  ;;  %v889_v23 = vmul.f32 %v2231_v22, %v2173_v52 }
  0x9e   : > { %v919_v55 = vadd.f32 %v887_v1, %v819_v38  ;;  %v1218_v63 = vadd.f32 %v1186_v30, %v1118_v51  ;;  %v789_v1 = vmul.f32 %v2180_v60, %v2081_v6  ;;  %v522_v34 = vadd.f32 %v490_v31, %v422_v0  ;;  %v1154_v51 = vld [vmem:[#allocation2 + $0x62] sm:$0xff]  ;;  %v1155_v0 = vld [vmem:[#allocation2 + $0x6a] sm:$0xff]  ;;  %v956_v31 = vld [vmem:[#allocation2 + $0x78] sm:$0xff] }
  0x9f   : > { %v1119_v11 = vadd.f32 %v1087_v41, %v1019_v2  ;;  %v920_v30 = vadd.f32 %v888_v45, %v820_v21  ;;  %v954_v41 = vld [vmem:[#allocation2 + $0x60] sm:$0xff]  ;;  %v590_v5 = vmul.f32 %v2201_v33, %v2166_v47  ;;  %v1090_v45 = vmul.f32 %v2182_v61, %v2090_v8  ;;  %v955_v21 = vld [vmem:[#allocation2 + $0x68] sm:$0xff] }
  0xa0   : > { %v1020_v40 = vadd.f32 %v988_v57, %v919_v55  ;;  %v1256_v29 = vadd.f32 %v2257_v35, %v1218_v63  ;;  %v721_v57 = vadd.f32 %v689_v27, %v621_v24  ;;  %v990_v38 = vmul.f32 %v2175_v53, %v954_v41 }
  0xa1   : > { %v1219_v62 = vadd.f32 %v1187_v43, %v1119_v11  ;;  %v1021_v43 = vadd.f32 %v989_v26, %v920_v30  ;;  %v622_v2 = vadd.f32 %v590_v5, %v522_v34  ;;  %v690_v54 = vmul.f32 %v2240_v36, %v2168_v48 }
  0xa2   : > { %v1120_v32 = vadd.f32 %v1088_v3, %v1020_v40  ;;  %1288 = vst [vmem:[%s2280_s26] sm:$0xff] %v1256_v29  ;;  %v821_v37 = vadd.f32 %v789_v1, %v721_v57  ;;  %v790_v26 = vmul.f32 %v2180_v60, %v2084_v7  ;;  %v423_v55 = vmul.f32 %v2213_v42, %v2162_v44 }
  0xa3   : > { %v1257_v28 = vadd.f32 %v2257_v35, %v1219_v62  ;;  %v1121_v50 = vadd.f32 %v1089_v58, %v1021_v43  ;;  %v491_v56 = vmul.f32 %v2164_v46, %v2081_v6  ;;  %v722_v63 = vadd.f32 %v690_v54, %v622_v2 }
  0xa4   : > { %v1220_v3 = vadd.f32 %v1188_v39, %v1120_v32  ;;  %v921_v39 = vadd.f32 %v889_v23, %v821_v37  ;;  %v1190_v11 = vmul.f32 %v2171_v49, %v1154_v51  ;;  %v591_v40 = vmul.f32 %v2231_v22, %v2166_v47  ;;  %v1156_v37 = vld [vmem:[#allocation2 + $0x7a] sm:$0xff] }
  0xa5   : > { %1289 = vst [vmem:[%s2280_s26 + $0x8] sm:$0xff] %v1257_v28  ;;  %v1221_v59 = vadd.f32 %v1189_v25, %v1121_v50  ;;  %v523_v27 = vadd.f32 %v491_v56, %v423_v55  ;;  %v822_v1 = vadd.f32 %v790_v26, %v722_v63  ;;  %v890_v42 = vmul.f32 %v2263_v4, %v2173_v52 }
  0xa6   : > { %v1258_v33 = vadd.f32 %v2257_v35, %v1220_v3  ;;  %v1022_v58 = vadd.f32 %v990_v38, %v921_v39  ;;  %v691_v6 = vmul.f32 %v954_v41, %v2168_v48  ;;  %v791_v30 = vmul.f32 %v2180_v60, %v2090_v8 }
  0xa7   : > { %v1259_v24 = vadd.f32 %v2257_v35, %v1221_v59  ;;  %v623_v62 = vadd.f32 %v591_v40, %v523_v27  ;;  %v424_v32 = vmul.f32 %v2240_v36, %v2162_v44  ;;  %v922_v22 = vadd.f32 %v890_v42, %v822_v1  ;;  %v1157_v27 = vld [vmem:[#allocation2 + $0x82] sm:$0xff] }
  0xa8   : > { %1290 = vst [vmem:[%s2280_s26 + $0x10] sm:$0xff] %v1258_v33  ;;  %v1122_v29 = vadd.f32 %v1090_v45, %v1022_v58  ;;  %v991_v25 = vmul.f32 %v2175_v53, %v955_v21  ;;  %v1091_v57 = vmul.f32 %v2182_v61, %v2093_v9  ;;  %v492_v23 = vmul.f32 %v2164_v46, %v2084_v7 }
  0xa9   : > { %1291 = vst [vmem:[%s2280_s26 + $0x18] sm:$0xff] %v1259_v24  ;;  %v1191_v43 = vmul.f32 %v2171_v49, %v1155_v0  ;;  %v723_v34 = vadd.f32 %v691_v6, %v623_v62  ;;  %v891_v5 = vmul.f32 %v1154_v51, %v2173_v52  ;;  %v992_v36 = vmul.f32 %v2175_v53, %v956_v31 }
  0xaa   : > { %v1222_v28 = vadd.f32 %v1190_v11, %v1122_v29  ;;  %v1023_v3 = vadd.f32 %v991_v25, %v922_v22  ;;  %v524_v38 = vadd.f32 %v492_v23, %v424_v32  ;;  %v592_v45 = vmul.f32 %v2263_v4, %v2166_v47 }
  0xab   : > { %v823_v2 = vadd.f32 %v791_v30, %v723_v34  ;;  %v692_v7 = vmul.f32 %v955_v21, %v2168_v48  ;;  %v425_v54 = vmul.f32 %v954_v41, %v2162_v44  ;;  %v792_v39 = vmul.f32 %v2180_v60, %v2093_v9  ;;  %v957_v41 = vld [vmem:[#allocation2 + $0x80] sm:$0xff] }
  0xac   : > { %v1260_v50 = vadd.f32 %v2257_v35, %v1222_v28  ;;  %v1123_v26 = vadd.f32 %v1091_v57, %v1023_v3  ;;  %v624_v33 = vadd.f32 %v592_v45, %v524_v38  ;;  %v493_v55 = vmul.f32 %v2164_v46, %v2090_v8 }
  0xad   : > { %v923_v56 = vadd.f32 %v891_v5, %v823_v2  ;;  %v1092_v4 = vmul.f32 %v2182_v61, %v2096_v10  ;;  %v1192_v59 = vmul.f32 %v2171_v49, %v1156_v37  ;;  %v892_v63 = vmul.f32 %v1155_v0, %v2173_v52 }
  0xae   : > { %1292 = vst [vmem:[%s2280_s26 + $0x20] sm:$0xff] %v1260_v50  ;;  %v1223_v58 = vadd.f32 %v1191_v43, %v1123_v26  ;;  %v724_v11 = vadd.f32 %v692_v7, %v624_v33  ;;  %v525_v40 = vadd.f32 %v493_v55, %v425_v54  ;;  %v593_v24 = vmul.f32 %v1154_v51, %v2166_v47  ;;  %v958_v43 = vld [vmem:[#allocation2 + $0x90] sm:$0xff]  ;;  %v2352_v7 = vld [vmem:[#allocation2 + $0x98] sm:$0xff] }
  0xaf   : > { %v1024_v1 = vadd.f32 %v992_v36, %v923_v56  ;;  %v693_v8 = vmul.f32 %v956_v31, %v2168_v48  ;;  %v793_v42 = vmul.f32 %v2180_v60, %v2096_v10  ;;  %v426_v6 = vmul.f32 %v955_v21, %v2162_v44  ;;  %v1158_v36 = vld [vmem:[#allocation2 + $0x92] sm:$0xff] }
  0xb0   : > { %v1261_v29 = vadd.f32 %v2257_v35, %v1223_v58  ;;  %v824_v62 = vadd.f32 %v792_v39, %v724_v11  ;;  %v625_v30 = vadd.f32 %v593_v24, %v525_v40  ;;  %v494_v32 = vmul.f32 %v2164_v46, %v2093_v9 }
  0xb1   : > { %v1124_v22 = vadd.f32 %v1092_v4, %v1024_v1  ;;  %v993_v25 = vmul.f32 %v2175_v53, %v957_v41  ;;  %v1093_v51 = vmul.f32 %v2182_v61, %v2104_v12  ;;  %v1193_v57 = vmul.f32 %v2171_v49, %v1157_v27 }
  0xb2   : > { %1293 = vst [vmem:[%s2280_s26 + $0x28] sm:$0xff] %v1261_v29  ;;  %v924_v23 = vadd.f32 %v892_v63, %v824_v62  ;;  %v725_v28 = vadd.f32 %v693_v8, %v625_v30  ;;  %v526_v21 = vadd.f32 %v494_v32, %v426_v6  ;;  %v594_v34 = vmul.f32 %v1155_v0, %v2166_v47  ;;  %v1159_v8 = vld [vmem:[#allocation2 + $0x9a] sm:$0xff] }
  0xb3   : > { %v1224_v5 = vadd.f32 %v1192_v59, %v1124_v22  ;;  %v893_v3 = vmul.f32 %v1156_v37, %v2173_v52  ;;  %v694_v9 = vmul.f32 %v957_v41, %v2168_v48  ;;  %v794_v38 = vmul.f32 %v2180_v60, %v2104_v12 }
  0xb4   : > { %v1025_v45 = vadd.f32 %v993_v25, %v924_v23  ;;  %v825_v50 = vadd.f32 %v793_v42, %v725_v28  ;;  %v626_v2 = vadd.f32 %v594_v34, %v526_v21  ;;  %v427_v54 = vmul.f32 %v956_v31, %v2162_v44  ;;  %v1160_v34 = vld [vmem:[#allocation2 + $0xaa] sm:$0xff] }
  0xb5   : > { %v1262_v26 = vadd.f32 %v2257_v35, %v1224_v5  ;;  %v994_v0 = vmul.f32 %v2175_v53, %v958_v43  ;;  %v1094_v33 = vmul.f32 %v2182_v61, %v2107_v13  ;;  %v495_v39 = vmul.f32 %v2164_v46, %v2096_v10 }
  0xb6   : > { %v1125_v55 = vadd.f32 %v1093_v51, %v1025_v45  ;;  %v925_v56 = vadd.f32 %v893_v3, %v825_v50  ;;  %v1194_v4 = vmul.f32 %v2171_v49, %v1158_v36  ;;  %v726_v59 = vadd.f32 %v694_v9, %v626_v2 }
  0xb7   : > { %1294 = vst [vmem:[%s2280_s26 + $0x30] sm:$0xff] %v1262_v26  ;;  %v894_v63 = vmul.f32 %v1157_v27, %v2173_v52  ;;  %v995_v31 = vmul.f32 %v2175_v53, %v2352_v7  ;;  %v527_v58 = vadd.f32 %v495_v39, %v427_v54  ;;  %v595_v11 = vmul.f32 %v1156_v37, %v2166_v47 }
  0xb8   : > { %v1225_v40 = vadd.f32 %v1193_v57, %v1125_v55  ;;  %v1026_v24 = vadd.f32 %v994_v0, %v925_v56  ;;  %v826_v1 = vadd.f32 %v794_v38, %v726_v59  ;;  %v695_v10 = vmul.f32 %v958_v43, %v2168_v48  ;;  %v960_v57 = vld [vmem:[#allocation2 + $0xa8] sm:$0xff] }
  0xb9   : > { %v627_v42 = vadd.f32 %v595_v11, %v527_v58  ;;  %v795_v6 = vmul.f32 %v2180_v60, %v2107_v13  ;;  %v428_v29 = vmul.f32 %v957_v41, %v2162_v44  ;;  %v496_v62 = vmul.f32 %v2164_v46, %v2104_v12  ;;  %v1161_v58 = vld [vmem:[#allocation2 + $0xb2] sm:$0xff] }
  0xba   : > { %v1263_v30 = vadd.f32 %v2257_v35, %v1225_v40  ;;  %v1126_v32 = vadd.f32 %v1094_v33, %v1026_v24  ;;  %v926_v37 = vadd.f32 %v894_v63, %v826_v1  ;;  %v1095_v22 = vmul.f32 %v2182_v61, %v2110_v14 }
  0xbb   : > { %v1195_v25 = vmul.f32 %v2171_v49, %v1159_v8  ;;  %v727_v51 = vadd.f32 %v695_v10, %v627_v42  ;;  %v528_v23 = vadd.f32 %v496_v62, %v428_v29  ;;  %v596_v28 = vmul.f32 %v1157_v27, %v2166_v47 }
  0xbc   : > { %1295 = vst [vmem:[%s2280_s26 + $0x38] sm:$0xff] %v1263_v30  ;;  %v1226_v21 = vadd.f32 %v1194_v4, %v1126_v32  ;;  %v1027_v41 = vadd.f32 %v995_v31, %v926_v37  ;;  %v895_v12 = vmul.f32 %v1158_v36, %v2173_v52  ;;  %v696_v5 = vmul.f32 %v2352_v7, %v2168_v48  ;;  %v962_v32 = vld [vmem:[#allocation2 + $0xc0] sm:$0xff] }
  0xbd   : > { %v827_v3 = vadd.f32 %v795_v6, %v727_v51  ;;  %v628_v9 = vadd.f32 %v596_v28, %v528_v23  ;;  %v796_v38 = vmul.f32 %v2180_v60, %v2110_v14  ;;  %v429_v45 = vmul.f32 %v958_v43, %v2162_v44  ;;  %v961_v43 = vld [vmem:[#allocation2 + $0xb0] sm:$0xff]  ;;  %v1162_v51 = vld [vmem:[#allocation2 + $0xc2] sm:$0xff] }
  0xbe   : > { %v1264_v50 = vadd.f32 %v2257_v35, %v1226_v21  ;;  %v1127_v27 = vadd.f32 %v1095_v22, %v1027_v41  ;;  %v996_v2 = vmul.f32 %v2175_v53, %v960_v57  ;;  %v497_v54 = vmul.f32 %v2164_v46, %v2107_v13 }
  0xbf   : > { %v927_v26 = vadd.f32 %v895_v12, %v827_v3  ;;  %v1096_v0 = vmul.f32 %v2182_v61, %v2116_v15  ;;  %v1196_v33 = vmul.f32 %v2171_v49, %v1160_v34  ;;  %v728_v39 = vadd.f32 %v696_v5, %v628_v9 }
  0xc0   : > { %1296 = vst [vmem:[%s2280_s26 + $0x40] sm:$0xff] %v1264_v50  ;;  %v1227_v55 = vadd.f32 %v1195_v25, %v1127_v27  ;;  %v896_v56 = vmul.f32 %v1159_v8, %v2173_v52  ;;  %v529_v4 = vadd.f32 %v497_v54, %v429_v45  ;;  %v597_v59 = vmul.f32 %v1158_v36, %v2166_v47 }
  0xc1   : > { %v1028_v63 = vadd.f32 %v996_v2, %v927_v26  ;;  %v828_v31 = vadd.f32 %v796_v38, %v728_v39  ;;  %v697_v13 = vmul.f32 %v960_v57, %v2168_v48  ;;  %v797_v11 = vmul.f32 %v2180_v60, %v2116_v15 }
  0xc2   : > { %v1265_v40 = vadd.f32 %v2257_v35, %v1227_v55  ;;  %v629_v24 = vadd.f32 %v597_v59, %v529_v4  ;;  %v430_v1 = vmul.f32 %v2352_v7, %v2162_v44  ;;  %v498_v10 = vmul.f32 %v2164_v46, %v2110_v14 }
  0xc3   : > { %v1128_v42 = vadd.f32 %v1096_v0, %v1028_v63  ;;  %v928_v6 = vadd.f32 %v896_v56, %v828_v31  ;;  %v997_v36 = vmul.f32 %v2175_v53, %v961_v43  ;;  %v1097_v29 = vmul.f32 %v2182_v61, %v2119_v16 }
  0xc4   : > { %1297 = vst [vmem:[%s2280_s26 + $0x48] sm:$0xff] %v1265_v40  ;;  %v1197_v62 = vmul.f32 %v2171_v49, %v1161_v58  ;;  %v729_v30 = vadd.f32 %v697_v13, %v629_v24  ;;  %v530_v37 = vadd.f32 %v498_v10, %v430_v1  ;;  %v598_v22 = vmul.f32 %v1159_v8, %v2166_v47  ;;  %v1163_v40 = vld [vmem:[#allocation2 + $0xca] sm:$0xff] }
  0xc5   : > { %v1228_v25 = vadd.f32 %v1196_v33, %v1128_v42  ;;  %v1029_v7 = vadd.f32 %v997_v36, %v928_v6  ;;  %v897_v14 = vmul.f32 %v1160_v34, %v2173_v52  ;;  %v698_v23 = vmul.f32 %v961_v43, %v2168_v48  ;;  %v964_v36 = vld [vmem:[#allocation2 + $0xd8] sm:$0xff] }
  0xc6   : > { %v829_v28 = vadd.f32 %v797_v11, %v729_v30  ;;  %v630_v21 = vadd.f32 %v598_v22, %v530_v37  ;;  %v798_v41 = vmul.f32 %v2180_v60, %v2119_v16  ;;  %v431_v12 = vmul.f32 %v960_v57, %v2162_v44  ;;  %v963_v57 = vld [vmem:[#allocation2 + $0xc8] sm:$0xff] }
  0xc7   : > { %v1266_v5 = vadd.f32 %v2257_v35, %v1228_v25  ;;  %v1129_v3 = vadd.f32 %v1097_v29, %v1029_v7  ;;  %v998_v8 = vmul.f32 %v2175_v53, %v962_v32  ;;  %v499_v9 = vmul.f32 %v2164_v46, %v2116_v15 }
  0xc8   : > { %v929_v38 = vadd.f32 %v897_v14, %v829_v28  ;;  %v1098_v45 = vmul.f32 %v2182_v61, %v2122_v17  ;;  %v1198_v50 = vmul.f32 %v2171_v49, %v1162_v51  ;;  %v730_v27 = vadd.f32 %v698_v23, %v630_v21 }
  0xc9   : > { %1298 = vst [vmem:[%s2280_s26 + $0x50] sm:$0xff] %v1266_v5  ;;  %v1229_v2 = vadd.f32 %v1197_v62, %v1129_v3  ;;  %v898_v54 = vmul.f32 %v1161_v58, %v2173_v52  ;;  %v531_v26 = vadd.f32 %v499_v9, %v431_v12  ;;  %v599_v0 = vmul.f32 %v1160_v34, %v2166_v47  ;;  %v2438_v62 = vld [vmem:[#allocation2 + $0xda] sm:$0xff]  ;;  %v466_v12 = vld [vmem:[#allocation2 + $0xc9] sm:$0xff] }
  0xca   : > { %v1030_v33 = vadd.f32 %v998_v8, %v929_v38  ;;  %v830_v39 = vadd.f32 %v798_v41, %v730_v27  ;;  %v699_v15 = vmul.f32 %v962_v32, %v2168_v48  ;;  %v799_v55 = vmul.f32 %v2180_v60, %v2122_v17  ;;  %v965_v5 = vld [vmem:[#allocation2 + $0xe0] sm:$0xff] }
  0xcb   : > { %v1267_v56 = vadd.f32 %v2257_v35, %v1229_v2  ;;  %v631_v4 = vadd.f32 %v599_v0, %v531_v26  ;;  %v432_v59 = vmul.f32 %v961_v43, %v2162_v44  ;;  %v500_v63 = vmul.f32 %v2164_v46, %v2119_v16  ;;  %v1165_v27 = vld [vmem:[#allocation2 + $0xe2] sm:$0xff] }
  0xcc   : > { %v1130_v31 = vadd.f32 %v1098_v45, %v1030_v33  ;;  %v930_v13 = vadd.f32 %v898_v54, %v830_v39  ;;  %v999_v11 = vmul.f32 %v2175_v53, %v963_v57  ;;  %v1099_v34 = vmul.f32 %v2182_v61, %v2128_v18 }
  0xcd   : > { %1299 = vst [vmem:[%s2280_s26 + $0x58] sm:$0xff] %v1267_v56  ;;  %v731_v24 = vadd.f32 %v699_v15, %v631_v4  ;;  %v532_v1 = vadd.f32 %v500_v63, %v432_v59  ;;  %v600_v10 = vmul.f32 %v1161_v58, %v2166_v47  ;;  %v899_v43 = vmul.f32 %v1162_v51, %v2173_v52  ;;  %v966_v56 = vld [vmem:[#allocation2 + $0xf0] sm:$0xff] }
  0xce   : > { %v1230_v42 = vadd.f32 %v1198_v50, %v1130_v31  ;;  %v1031_v6 = vadd.f32 %v999_v11, %v930_v13  ;;  %v700_v16 = vmul.f32 %v963_v57, %v2168_v48  ;;  %v800_v37 = vmul.f32 %v2180_v60, %v2128_v18  ;;  %v765_v50 = vld [vmem:[#allocation2 + $0xd9] sm:$0xff]  ;;  %v1066_v11 = vld [vmem:[#allocation2 + $0xf1] sm:$0xff] }
  0xcf   : > { %v831_v29 = vadd.f32 %v799_v55, %v731_v24  ;;  %v632_v30 = vadd.f32 %v600_v10, %v532_v1  ;;  %v433_v22 = vmul.f32 %v962_v32, %v2162_v44  ;;  %v1199_v7 = vmul.f32 %v2171_v49, %v1163_v40 }
  0xd0   : > { %v1268_v25 = vadd.f32 %v2257_v35, %v1230_v42  ;;  %v1131_v58 = vadd.f32 %v1099_v34, %v1031_v6  ;;  %v501_v14 = vmul.f32 %v2164_v46, %v2122_v17  ;;  %v1000_v28 = vmul.f32 %v2175_v53, %v964_v36  ;;  %v766_v34 = vld [vmem:[#allocation2 + $0xe1] sm:$0xff] }
  0xd1   : > { %v931_v23 = vadd.f32 %v899_v43, %v831_v29  ;;  %v1100_v21 = vmul.f32 %v2182_v61, %v2131_v19  ;;  %v732_v41 = vadd.f32 %v700_v16, %v632_v30  ;;  %v1200_v32 = vmul.f32 %v2171_v49, %v2438_v62 }
  0xd2   : > { %1300 = vst [vmem:[%s2280_s26 + $0x60] sm:$0xff] %v1268_v25  ;;  %v1231_v18 = vadd.f32 %v1199_v7, %v1131_v58  ;;  %v533_v3 = vadd.f32 %v501_v14, %v433_v22  ;;  %v601_v8 = vmul.f32 %v1162_v51, %v2166_v47  ;;  %v900_v38 = vmul.f32 %v1163_v40, %v2173_v52  ;;  %v967_v7 = vld [vmem:[#allocation2 + $0xf8] sm:$0xff] }
  0xd3   : > { %v1032_v9 = vadd.f32 %v1000_v28, %v931_v23  ;;  %v832_v17 = vadd.f32 %v800_v37, %v732_v41  ;;  %v701_v45 = vmul.f32 %v964_v36, %v2168_v48  ;;  %v434_v54 = vmul.f32 %v963_v57, %v2162_v44  ;;  %v1067_v14 = vld [vmem:[#allocation2 + $0xf9] sm:$0xff] }
  0xd4   : > { %v1269_v19 = vadd.f32 %v2257_v35, %v1231_v18  ;;  %v633_v2 = vadd.f32 %v601_v8, %v533_v3  ;;  %v502_v26 = vmul.f32 %v2164_v46, %v466_v12  ;;  %v1001_v39 = vmul.f32 %v2175_v53, %v965_v5 }
  0xd5   : > { %v1132_v0 = vadd.f32 %v1100_v21, %v1032_v9  ;;  %v932_v33 = vadd.f32 %v900_v38, %v832_v17  ;;  %v1101_v51 = vmul.f32 %v2182_v61, %v2134_v20  ;;  %v801_v55 = vmul.f32 %v2180_v60, %v765_v50  ;;  %v1166_v20 = vld [vmem:[#allocation2 + $0xf2] sm:$0xff] }
  0xd6   : > { %1301 = vst [vmem:[%s2280_s26 + $0x68] sm:$0xff] %v1269_v19  ;;  %v733_v15 = vadd.f32 %v701_v45, %v633_v2  ;;  %v534_v4 = vadd.f32 %v502_v26, %v434_v54  ;;  %v602_v59 = vmul.f32 %v1163_v40, %v2166_v47  ;;  %v1201_v57 = vmul.f32 %v2171_v49, %v1165_v27  ;;  %v968_v2 = vld [vmem:[#allocation2 + $0x108] sm:$0xff] }
  0xd7   : > { %v1232_v63 = vadd.f32 %v1200_v32, %v1132_v0  ;;  %v1033_v31 = vadd.f32 %v1001_v39, %v932_v33  ;;  %v901_v13 = vmul.f32 %v2438_v62, %v2173_v52  ;;  %v702_v10 = vmul.f32 %v965_v5, %v2168_v48  ;;  %v1167_v32 = vld [vmem:[#allocation2 + $0xfa] sm:$0xff] }
  0xd8   : > { %v833_v24 = vadd.f32 %v801_v55, %v733_v15  ;;  %v634_v1 = vadd.f32 %v602_v59, %v534_v4  ;;  %v435_v42 = vmul.f32 %v964_v36, %v2162_v44  ;;  %v1002_v43 = vmul.f32 %v2175_v53, %v966_v56  ;;  %v1168_v55 = vld [vmem:[#allocation2 + $0x10a] sm:$0xff] }
  0xd9   : > { %v1270_v6 = vadd.f32 %v2257_v35, %v1232_v63  ;;  %v1133_v40 = vadd.f32 %v1101_v51, %v1033_v31  ;;  %v503_v16 = vmul.f32 %v765_v50, %v2164_v46  ;;  %v1102_v30 = vmul.f32 %v2182_v61, %v1066_v11  ;;  %v1068_v51 = vld [vmem:[#allocation2 + $0x109] sm:$0xff] }
  0xda   : > { %v933_v29 = vadd.f32 %v901_v13, %v833_v24  ;;  %v734_v37 = vadd.f32 %v702_v10, %v634_v1  ;;  %v802_v22 = vmul.f32 %v2180_v60, %v766_v34  ;;  %v1202_v58 = vmul.f32 %v2171_v49, %v1166_v20 }
  0xdb   : > { %1302 = vst [vmem:[%s2280_s26 + $0x70] sm:$0xff] %v1270_v6  ;;  %v1233_v25 = vadd.f32 %v1201_v57, %v1133_v40  ;;  %v535_v36 = vadd.f32 %v503_v16, %v435_v42  ;;  %v603_v23 = vmul.f32 %v2438_v62, %v2166_v47  ;;  %v902_v41 = vmul.f32 %v1165_v27, %v2173_v52  ;;  %v969_v40 = vld [vmem:[#allocation2 + $0x110] sm:$0xff] }
  0xdc   : > { %v1034_v28 = vadd.f32 %v1002_v43, %v933_v29  ;;  %v834_v21 = vadd.f32 %v802_v22, %v734_v37  ;;  %v703_v12 = vmul.f32 %v966_v56, %v2168_v48  ;;  %v436_v8 = vmul.f32 %v965_v5, %v2162_v44  ;;  %v1069_v43 = vld [vmem:[#allocation2 + $0x111] sm:$0xff] }
  0xdd   : > { %v1271_v18 = vadd.f32 %v2257_v35, %v1233_v25  ;;  %v635_v3 = vadd.f32 %v603_v23, %v535_v36  ;;  %v504_v9 = vmul.f32 %v766_v34, %v2164_v46  ;;  %v1003_v45 = vmul.f32 %v2175_v53, %v967_v7  ;;  %v1169_v25 = vld [vmem:[#allocation2 + $0x112] sm:$0xff] }
  0xde   : > { %v1134_v17 = vadd.f32 %v1102_v30, %v1034_v28  ;;  %v934_v38 = vadd.f32 %v902_v41, %v834_v21  ;;  %v1103_v62 = vmul.f32 %v2182_v61, %v1067_v14  ;;  %v803_v19 = vmul.f32 %v1066_v11, %v2180_v60 }
  0xdf   : > { %1303 = vst [vmem:[%s2280_s26 + $0x78] sm:$0xff] %v1271_v18  ;;  %v735_v50 = vadd.f32 %v703_v12, %v635_v3  ;;  %v536_v54 = vadd.f32 %v504_v9, %v436_v8  ;;  %v604_v26 = vmul.f32 %v1165_v27, %v2166_v47  ;;  %v1203_v5 = vmul.f32 %v2171_v49, %v1167_v32  ;;  %v970_v3 = vld [vmem:[#allocation2 + $0x120] sm:$0xff] }
  0xe0   : > { %v1234_v0 = vadd.f32 %v1202_v58, %v1134_v17  ;;  %v1035_v33 = vadd.f32 %v1003_v45, %v934_v38  ;;  %v903_v39 = vmul.f32 %v1166_v20, %v2173_v52  ;;  %v704_v59 = vmul.f32 %v967_v7, %v2168_v48  ;;  %v1070_v45 = vld [vmem:[#allocation2 + $0x121] sm:$0xff] }
  0xe1   : > { %v835_v15 = vadd.f32 %v803_v19, %v735_v50  ;;  %v636_v4 = vadd.f32 %v604_v26, %v536_v54  ;;  %v437_v63 = vmul.f32 %v966_v56, %v2162_v44  ;;  %v1004_v27 = vmul.f32 %v2175_v53, %v968_v2  ;;  %v1170_v50 = vld [vmem:[#allocation2 + $0x122] sm:$0xff] }
  0xe2   : > { %v1272_v31 = vadd.f32 %v2257_v35, %v1234_v0  ;;  %v1135_v57 = vadd.f32 %v1103_v62, %v1035_v33  ;;  %v505_v13 = vmul.f32 %v1066_v11, %v2164_v46  ;;  %v1104_v24 = vmul.f32 %v2182_v61, %v1068_v51 }
  0xe3   : > { %v935_v34 = vadd.f32 %v903_v39, %v835_v15  ;;  %v736_v1 = vadd.f32 %v704_v59, %v636_v4  ;;  %v804_v10 = vmul.f32 %v1067_v14, %v2180_v60  ;;  %v1204_v6 = vmul.f32 %v2171_v49, %v1168_v55 }
  0xe4   : > { %1304 = vst [vmem:[%s2280_s26 + $0x80] sm:$0xff] %v1272_v31  ;;  %v1235_v42 = vadd.f32 %v1203_v5, %v1135_v57  ;;  %v537_v56 = vadd.f32 %v505_v13, %v437_v63  ;;  %v605_v16 = vmul.f32 %v1166_v20, %v2166_v47  ;;  %v904_v11 = vmul.f32 %v1167_v32, %v2173_v52  ;;  %v971_v57 = vld [vmem:[#allocation2 + $0x128] sm:$0xff] }
  0xe5   : > { %v1036_v29 = vadd.f32 %v1004_v27, %v935_v34  ;;  %v836_v30 = vadd.f32 %v804_v10, %v736_v1  ;;  %v705_v37 = vmul.f32 %v968_v2, %v2168_v48  ;;  %v438_v36 = vmul.f32 %v967_v7, %v2162_v44  ;;  %v1071_v27 = vld [vmem:[#allocation2 + $0x129] sm:$0xff] }
  0xe6   : > { %v1273_v22 = vadd.f32 %v2257_v35, %v1235_v42  ;;  %v637_v58 = vadd.f32 %v605_v16, %v537_v56  ;;  %v506_v23 = vmul.f32 %v1067_v14, %v2164_v46  ;;  %v1005_v41 = vmul.f32 %v2175_v53, %v969_v40  ;;  %v1171_v42 = vld [vmem:[#allocation2 + $0x12a] sm:$0xff] }
  0xe7   : > { %v1136_v28 = vadd.f32 %v1104_v24, %v1036_v29  ;;  %v936_v21 = vadd.f32 %v904_v11, %v836_v30  ;;  %v1105_v20 = vmul.f32 %v2182_v61, %v1069_v43  ;;  %v805_v18 = vmul.f32 %v1068_v51, %v2180_v60 }
  0xe8   : > { %1305 = vst [vmem:[%s2280_s26 + $0x88] sm:$0xff] %v1273_v22  ;;  %v737_v12 = vadd.f32 %v705_v37, %v637_v58  ;;  %v538_v8 = vadd.f32 %v506_v23, %v438_v36  ;;  %v606_v9 = vmul.f32 %v1167_v32, %v2166_v47  ;;  %v1205_v7 = vmul.f32 %v2171_v49, %v1169_v25  ;;  %v972_v58 = vld [vmem:[#allocation2 + $0x138] sm:$0xff] }
  0xe9   : > { %v1236_v17 = vadd.f32 %v1204_v6, %v1136_v28  ;;  %v1037_v38 = vadd.f32 %v1005_v41, %v936_v21  ;;  %v905_v14 = vmul.f32 %v1168_v55, %v2173_v52  ;;  %v706_v54 = vmul.f32 %v969_v40, %v2168_v48  ;;  %v1072_v41 = vld [vmem:[#allocation2 + $0x139] sm:$0xff] }
  0xea   : > { %v837_v62 = vadd.f32 %v805_v18, %v737_v12  ;;  %v638_v19 = vadd.f32 %v606_v9, %v538_v8  ;;  %v439_v26 = vmul.f32 %v968_v2, %v2162_v44  ;;  %v1006_v32 = vmul.f32 %v2175_v53, %v970_v3  ;;  %v2535_v12 = vld [vmem:[#allocation2 + $0x13a] sm:$0xff] }
  0xeb   : > { %v1274_v0 = vadd.f32 %v2257_v35, %v1236_v17  ;;  %v1137_v33 = vadd.f32 %v1105_v20, %v1037_v38  ;;  %v507_v5 = vmul.f32 %v1068_v51, %v2164_v46  ;;  %v1106_v15 = vmul.f32 %v2182_v61, %v1070_v45 }
  0xec   : > { %v937_v39 = vadd.f32 %v905_v14, %v837_v62  ;;  %v738_v4 = vadd.f32 %v706_v54, %v638_v19  ;;  %v806_v59 = vmul.f32 %v1069_v43, %v2180_v60  ;;  %v1206_v31 = vmul.f32 %v2171_v49, %v1170_v50 }
  0xed   : > { %1306 = vst [vmem:[%s2280_s26 + $0x90] sm:$0xff] %v1274_v0  ;;  %v1237_v63 = vadd.f32 %v1205_v7, %v1137_v33  ;;  %v539_v2 = vadd.f32 %v507_v5, %v439_v26  ;;  %v607_v13 = vmul.f32 %v1168_v55, %v2166_v47  ;;  %v906_v51 = vmul.f32 %v1169_v25, %v2173_v52  ;;  %v973_v33 = vld [vmem:[#allocation2 + $0x140] sm:$0xff] }
  0xee   : > { %v1038_v34 = vadd.f32 %v1006_v32, %v937_v39  ;;  %v838_v24 = vadd.f32 %v806_v59, %v738_v4  ;;  %v707_v1 = vmul.f32 %v970_v3, %v2168_v48  ;;  %v440_v56 = vmul.f32 %v969_v40, %v2162_v44 }
  0xef   : > { %v1275_v10 = vadd.f32 %v2257_v35, %v1237_v63  ;;  %v639_v6 = vadd.f32 %v607_v13, %v539_v2  ;;  %v508_v16 = vmul.f32 %v1069_v43, %v2164_v46  ;;  %v1007_v11 = vmul.f32 %v2175_v53, %v971_v57  ;;  %v1173_v63 = vld [vmem:[#allocation2 + $0x142] sm:$0xff] }
  0xf0   : > { %v1138_v29 = vadd.f32 %v1106_v15, %v1038_v34  ;;  %v938_v30 = vadd.f32 %v906_v51, %v838_v24  ;;  %v1107_v55 = vmul.f32 %v2182_v61, %v1071_v27  ;;  %v807_v22 = vmul.f32 %v1070_v45, %v2180_v60 }
  0xf1   : > { %1307 = vst [vmem:[%s2280_s26 + $0x98] sm:$0xff] %v1275_v10  ;;  %v739_v37 = vadd.f32 %v707_v1, %v639_v6  ;;  %v540_v36 = vadd.f32 %v508_v16, %v440_v56  ;;  %v608_v23 = vmul.f32 %v1169_v25, %v2166_v47  ;;  %v1207_v40 = vmul.f32 %v2171_v49, %v1171_v42  ;;  %v974_v10 = vld [vmem:[#allocation2 + $0x150] sm:$0xff] }
  0xf2   : > { %v1238_v28 = vadd.f32 %v1206_v31, %v1138_v29  ;;  %v1039_v21 = vadd.f32 %v1007_v11, %v938_v30  ;;  %v907_v43 = vmul.f32 %v1170_v50, %v2173_v52  ;;  %v708_v8 = vmul.f32 %v971_v57, %v2168_v48  ;;  %v2559_v30 = vld [vmem:[%s2059_s23 + $0x8] ss:$0 sm:$0xff]  ;;  %s2659_s23 = scalar_lea.hbm %s2766_s15, %s1472_s6 }
  0xf3   : > { %v839_v20 = vadd.f32 %v807_v22, %v739_v37  ;;  %v640_v18 = vadd.f32 %v608_v23, %v540_v36  ;;  %v441_v9 = vmul.f32 %v970_v3, %v2162_v44  ;;  %v1008_v25 = vmul.f32 %v2175_v53, %v972_v58  ;;  %v1073_v3 = vld [vmem:[#allocation2 + $0x141] sm:$0xff]  ;;  %v1074_v11 = vld [vmem:[#allocation2 + $0x151] sm:$0xff] }
  0xf4   : > { %v1276_v17 = vadd.f32 %v2257_v35, %v1238_v28  ;;  %v1139_v38 = vadd.f32 %v1107_v55, %v1039_v21  ;;  %v509_v7 = vmul.f32 %v1070_v45, %v2164_v46  ;;  %v1108_v62 = vmul.f32 %v2182_v61, %v1072_v41  ;;  %v2564_v37 = vld [vmem:[#allocation2 + $0x152] sm:$0xff] }
  0xf5   : > { %v939_v14 = vadd.f32 %v907_v43, %v839_v20  ;;  %v740_v19 = vadd.f32 %v708_v8, %v640_v18  ;;  %v808_v54 = vmul.f32 %v1071_v27, %v2180_v60  ;;  %v1208_v0 = vmul.f32 %v2171_v49, %v2535_v12 }
  0xf6   : > { %1308 = vst [vmem:[%s2280_s26 + $0xa0] sm:$0xff] %v1276_v17  ;;  %v1239_v26 = vadd.f32 %v1207_v40, %v1139_v38  ;;  %v541_v32 = vadd.f32 %v509_v7, %v441_v9  ;;  %v609_v5 = vmul.f32 %v1170_v50, %v2166_v47  ;;  %v908_v45 = vmul.f32 %v1171_v42, %v2173_v52  ;;  %v975_v38 = vld [vmem:[#allocation2 + $0x158] sm:$0xff] }
  0xf7   : > { %v1040_v39 = vadd.f32 %v1008_v25, %v939_v14  ;;  %v840_v15 = vadd.f32 %v808_v54, %v740_v19  ;;  %v709_v4 = vmul.f32 %v972_v58, %v2168_v48  ;;  %v442_v2 = vmul.f32 %v971_v57, %v2162_v44 }
  0xf8   : > { %v1277_v59 = vadd.f32 %v2257_v35, %v1239_v26  ;;  %v641_v31 = vadd.f32 %v609_v5, %v541_v32  ;;  %v510_v49 = vmul.f32 %v1071_v27, %v2164_v46  ;;  %v1009_v24 = vmul.f32 %v2175_v53, %v973_v33  ;;  %v1175_v26 = vld [vmem:[#allocation2 + $0x15a] sm:$0xff] }
  0xf9   : > { %v1140_v13 = vadd.f32 %v1108_v62, %v1040_v39  ;;  %v940_v34 = vadd.f32 %v908_v45, %v840_v15  ;;  %v1109_v50 = vmul.f32 %v2182_v61, %v1073_v3  ;;  %v809_v1 = vmul.f32 %v1072_v41, %v2180_v60 }
  0xfa   : > { %1309 = vst [vmem:[%s2280_s26 + $0xa8] sm:$0xff] %v1277_v59  ;;  %v741_v51 = vadd.f32 %v709_v4, %v641_v31  ;;  %v542_v6 = vadd.f32 %v510_v49, %v442_v2  ;;  %v610_v56 = vmul.f32 %v1171_v42, %v2166_v47  ;;  %v1209_v57 = vmul.f32 %v2559_v30, %v1173_v63  ;;  %v976_v31 = vld [vmem:[#allocation2 + $0x168] sm:$0xff] }
  0xfb   : > { %v1240_v16 = vadd.f32 %v1208_v0, %v1140_v13  ;;  %v1041_v29 = vadd.f32 %v1009_v24, %v940_v34  ;;  %v909_v27 = vmul.f32 %v2535_v12, %v2173_v52  ;;  %v710_v36 = vmul.f32 %v973_v33, %v2168_v48  ;;  %v1076_v34 = vld [vmem:[#allocation2 + $0x169] sm:$0xff] }
  0xfc   : > { %v841_v55 = vadd.f32 %v809_v1, %v741_v51  ;;  %v642_v22 = vadd.f32 %v610_v56, %v542_v6  ;;  %v443_v23 = vmul.f32 %v972_v58, %v2162_v44  ;;  %v1010_v21 = vmul.f32 %v2175_v53, %v974_v10  ;;  %v1075_v58 = vld [vmem:[#allocation2 + $0x159] sm:$0xff] }
  0xfd   : > { %v1278_v42 = vadd.f32 %v2257_v35, %v1240_v16  ;;  %v1141_v28 = vadd.f32 %v1109_v50, %v1041_v29  ;;  %v511_v40 = vmul.f32 %v1072_v41, %v2164_v46  ;;  %v1110_v20 = vmul.f32 %v2182_v61, %v1074_v11  ;;  %v1176_v50 = vld [vmem:[#allocation2 + $0x16a] sm:$0xff]  ;;  %v2594_v56 = vld [vmem:[%s2245_s28] ss:$0 sm:$0xff]  ;;  %s1658_s28 = scalar_lea.vmem %s1657_s19, 8192 }
  0xfe   : > { %v941_v43 = vadd.f32 %v909_v27, %v841_v55  ;;  %v742_v18 = vadd.f32 %v710_v36, %v642_v22  ;;  %v810_v8 = vmul.f32 %v1073_v3, %v2180_v60  ;;  %v1210_v17 = vmul.f32 %v2559_v30, %v2564_v37  ;;  %p1660_p1 = scmp.lt.s32.totalorder %s1658_s28, %s1652_s4 }
  0xff   : > { %1310 = vst [vmem:[%s2280_s26 + $0xb0] sm:$0xff] %v1278_v42  ;;  %v1241_v9 = vadd.f32 %v1209_v57, %v1141_v28  ;;  %v543_v25 = vadd.f32 %v511_v40, %v443_v23  ;;  %v611_v7 = vmul.f32 %v2535_v12, %v2166_v47  ;;  %v910_v62 = vmul.f32 %v1173_v63, %v2173_v52  ;;  %v1077_v28 = vld [vmem:[#allocation2 + $0x171] sm:$0xff] }
 0x100   : > { %v1042_v14 = vadd.f32 %v1010_v21, %v941_v43  ;;  %v842_v41 = vadd.f32 %v810_v8, %v742_v18  ;;  %v711_v19 = vmul.f32 %v974_v10, %v2168_v48  ;;  %v444_v32 = vmul.f32 %v973_v33, %v2162_v44  ;;  %p1661_p6 = por %p1660_p1, %p1659_p5 }
 0x101   : > { %v1279_v54 = vadd.f32 %v2257_v35, %v1241_v9  ;;  %v643_v0 = vadd.f32 %v611_v7, %v543_v25  ;;  %v512_v5 = vmul.f32 %v1073_v3, %v2164_v46  ;;  %v1011_v45 = vmul.f32 %v2175_v53, %v975_v38  ;;  %v1177_v9 = vld [vmem:[#allocation2 + $0x172] sm:$0xff] }
 0x102   : > { %v1142_v39 = vadd.f32 %v1110_v20, %v1042_v14  ;;  %v942_v15 = vadd.f32 %v910_v62, %v842_v41  ;;  %v1111_v12 = vmul.f32 %v2182_v61, %v1075_v58  ;;  %v811_v59 = vmul.f32 %v1074_v11, %v2180_v60  ;;  %p1662_p2 = pnand %p1661_p6, %p1655_p12 }
 0x103   : > { %1311 = vst [vmem:[%s2280_s26 + $0xb8] sm:$0xff] %v1279_v54  ;;  %v743_v4 = vadd.f32 %v711_v19, %v643_v0  ;;  %v544_v2 = vadd.f32 %v512_v5, %v444_v32  ;;  %v612_v35 = vmul.f32 %v1173_v63, %v2166_v47  ;;  %v1211_v33 = vmul.f32 %v2559_v30, %v1175_v26  ;;  %v978_v0 = vld [vmem:[#allocation2 + $0x180] sm:$0xff] }
 0x104   : > { %v1242_v49 = vadd.f32 %v1210_v17, %v1142_v39  ;;  %v1043_v13 = vadd.f32 %v1011_v45, %v942_v15  ;;  %v911_v3 = vmul.f32 %v2564_v37, %v2173_v52  ;;  %v712_v1 = vmul.f32 %v975_v38, %v2168_v48  ;;  %v1078_v45 = vld [vmem:[#allocation2 + $0x181] sm:$0xff] }
 0x105   : > { %v843_v24 = vadd.f32 %v811_v59, %v743_v4  ;;  %v644_v51 = vadd.f32 %v612_v35, %v544_v2  ;;  %v445_v6 = vmul.f32 %v974_v10, %v2162_v44  ;;  %v1012_v29 = vmul.f32 %v2175_v53, %v976_v31  ;;  %v977_v10 = vld [vmem:[#allocation2 + $0x170] sm:$0xff] }
 0x106   : > { %v1280_v63 = vadd.f32 %v2594_v56, %v1242_v49  ;;  %v1143_v16 = vadd.f32 %v1111_v12, %v1043_v13  ;;  %v513_v57 = vmul.f32 %v1074_v11, %v2164_v46  ;;  %v1112_v55 = vmul.f32 %v2182_v61, %v1076_v34 }
 0x107   : > { %v943_v27 = vadd.f32 %v911_v3, %v843_v24  ;;  %v744_v22 = vadd.f32 %v712_v1, %v644_v51  ;;  %v812_v36 = vmul.f32 %v1075_v58, %v2180_v60  ;;  %v1212_v42 = vmul.f32 %v2559_v30, %v1176_v50 }
 0x108   : > { %1312 = vst [vmem:[%s2280_s26 + $0xc0] sm:$0xff] %v1280_v63  ;;  %v1243_v23 = vadd.f32 %v1211_v33, %v1143_v16  ;;  %v545_v21 = vadd.f32 %v513_v57, %v445_v6  ;;  %v613_v40 = vmul.f32 %v2564_v37, %v2166_v47  ;;  %v912_v11 = vmul.f32 %v1175_v26, %v2173_v52  ;;  %v979_v63 = vld [vmem:[#allocation2 + $0x188] sm:$0xff] }
 0x109   : > { %v1044_v43 = vadd.f32 %v1012_v29, %v943_v27  ;;  %v844_v20 = vadd.f32 %v812_v36, %v744_v22  ;;  %v713_v18 = vmul.f32 %v976_v31, %v2168_v48  ;;  %v446_v25 = vmul.f32 %v975_v38, %v2162_v44  ;;  %v1079_v36 = vld [vmem:[#allocation2 + $0x189] sm:$0xff] }
 0x10a   : > { %v1281_v8 = vadd.f32 %v2594_v56, %v1243_v23  ;;  %v645_v17 = vadd.f32 %v613_v40, %v545_v21  ;;  %v514_v7 = vmul.f32 %v1075_v58, %v2164_v46  ;;  %v1013_v62 = vmul.f32 %v2175_v53, %v977_v10 }
 0x10b   : > { %v1144_v14 = vadd.f32 %v1112_v55, %v1044_v43  ;;  %v944_v41 = vadd.f32 %v912_v11, %v844_v20  ;;  %v1113_v37 = vmul.f32 %v2182_v61, %v1077_v28  ;;  %v813_v54 = vmul.f32 %v1076_v34, %v2180_v60  ;;  %v1179_v11 = vld [vmem:[#allocation2 + $0x18a] sm:$0xff] }
 0x10c   : > { %1313 = vst [vmem:[%s2280_s26 + $0xc8] sm:$0xff] %v1281_v8  ;;  %v745_v19 = vadd.f32 %v713_v18, %v645_v17  ;;  %v546_v32 = vadd.f32 %v514_v7, %v446_v25  ;;  %v614_v5 = vmul.f32 %v1175_v26, %v2166_v47  ;;  %v1213_v38 = vmul.f32 %v2559_v30, %v1177_v9  ;;  %v1178_v26 = vld [vmem:[#allocation2 + $0x182] sm:$0xff] }
 0x10d   : > { %v1244_v39 = vadd.f32 %v1212_v42, %v1144_v14  ;;  %v1045_v15 = vadd.f32 %v1013_v62, %v944_v41  ;;  %v913_v58 = vmul.f32 %v1176_v50, %v2173_v52  ;;  %v714_v59 = vmul.f32 %v977_v10, %v2168_v48  ;;  %v1591_v41 = vld [vmem:[#allocation2] sm:$0xff] }
 0x10e   : > { %v845_v12 = vadd.f32 %v813_v54, %v745_v19  ;;  %v646_v4 = vadd.f32 %v614_v5, %v546_v32  ;;  %v447_v2 = vmul.f32 %v976_v31, %v2162_v44  ;;  %v1014_v13 = vmul.f32 %v2175_v53, %v978_v0 }
 0x10f   : > { %v1282_v35 = vadd.f32 %v2594_v56, %v1244_v39  ;;  %v1145_v49 = vadd.f32 %v1113_v37, %v1045_v15  ;;  %v515_v33 = vmul.f32 %v1076_v34, %v2164_v46  ;;  %v1114_v24 = vmul.f32 %v2182_v61, %v1078_v45  ;;  %v1180_v39 = vld [vmem:[#allocation2 + $0x19a] sm:$0xff] }
 0x110   : > { %v945_v3 = vadd.f32 %v913_v58, %v845_v12  ;;  %v746_v51 = vadd.f32 %v714_v59, %v646_v4  ;;  %v814_v1 = vmul.f32 %v1077_v28, %v2180_v60  ;;  %v615_v31 = vmul.f32 %v1176_v50, %v2166_v47  ;;  %v1081_v15 = vld [vmem:[#allocation2 + $0x1a1] sm:$0xff] }
 0x111   : > { %1314 = vst [vmem:[%s2280_s26 + $0xd0] sm:$0xff] %v1282_v35  ;;  %v1245_v6 = vadd.f32 %v1213_v38, %v1145_v49  ;;  %v547_v16 = vadd.f32 %v515_v33, %v447_v2  ;;  %v715_v29 = vmul.f32 %v978_v0, %v2168_v48  ;;  %v1214_v27 = vmul.f32 %v2559_v30, %v1178_v26 }
 0x112   : > { %v1046_v57 = vadd.f32 %v1014_v13, %v945_v3  ;;  %v846_v55 = vadd.f32 %v814_v1, %v746_v51  ;;  %v914_v34 = vmul.f32 %v1177_v9, %v2173_v52  ;;  %v448_v42 = vmul.f32 %v977_v10, %v2162_v44 }
 0x113   : > { %v1283_v22 = vadd.f32 %v2594_v56, %v1245_v6  ;;  %v647_v23 = vadd.f32 %v615_v31, %v547_v16  ;;  %v516_v21 = vmul.f32 %v1077_v28, %v2164_v46  ;;  %v1015_v50 = vmul.f32 %v2175_v53, %v979_v63  ;;  %v1080_v46 = vld [vmem:[#allocation2 + $0x199] sm:$0xff] }
 0x114   : > { %v1146_v40 = vadd.f32 %v1114_v24, %v1046_v57  ;;  %v946_v43 = vadd.f32 %v914_v34, %v846_v55  ;;  %v815_v20 = vmul.f32 %v1078_v45, %v2180_v60  ;;  %v616_v17 = vmul.f32 %v1177_v9, %v2166_v47 }
 0x115   : > { %1315 = vst [vmem:[%s2280_s26 + $0xd8] sm:$0xff] %v1283_v22  ;;  %v747_v18 = vadd.f32 %v715_v29, %v647_v23  ;;  %v548_v8 = vadd.f32 %v516_v21, %v448_v42  ;;  %v716_v25 = vmul.f32 %v979_v63, %v2168_v48  ;;  %v1115_v44 = vmul.f32 %v2182_v61, %v1079_v36 }
 0x116   : > { %v1246_v7 = vadd.f32 %v1214_v27, %v1146_v40  ;;  %v1047_v14 = vadd.f32 %v1015_v50, %v946_v43  ;;  %v915_v28 = vmul.f32 %v1178_v26, %v2173_v52  ;;  %v1016_v62 = vmul.f32 %v1591_v41, %v2175_v53 }
 0x117   : > { %v847_v10 = vadd.f32 %v815_v20, %v747_v18  ;;  %v648_v37 = vadd.f32 %v616_v17, %v548_v8  ;;  %v1215_v47 = vmul.f32 %v2559_v30, %v1179_v11  ;;  %v1116_v9 = vmul.f32 %v2182_v61, %v1080_v46 }
 0x118   : > { %v1284_v19 = vadd.f32 %v2594_v56, %v1246_v7  ;;  %v1147_v54 = vadd.f32 %v1115_v44, %v1047_v14  ;;  %v816_v32 = vmul.f32 %v1079_v36, %v2180_v60  ;;  %v916_v58 = vmul.f32 %v1179_v11, %v2173_v52  ;;  %v1181_v60 = vld [vmem:[#allocation2 + $0x1a2] sm:$0xff] }
 0x119   : > { %v947_v48 = vadd.f32 %v915_v28, %v847_v10  ;;  %v748_v0 = vadd.f32 %v716_v25, %v648_v37  ;;  %v1216_v4 = vmul.f32 %v2559_v30, %v1180_v39  ;;  %v1117_v2 = vmul.f32 %v2182_v61, %v1081_v15 }
 0x11a   : > { %1316 = vst [vmem:[%s2280_s26 + $0xe0] sm:$0xff] %v1284_v19  ;;  %v1247_v5 = vadd.f32 %v1215_v47, %v1147_v54  ;;  %v1217_v26 = vmul.f32 %v2559_v30, %v1181_v60 }
 0x11b   : > { %v1048_v53 = vadd.f32 %v1016_v62, %v947_v48  ;;  %v848_v38 = vadd.f32 %v816_v32, %v748_v0 }
 0x11c   : > { %v1285_v45 = vadd.f32 %v2594_v56, %v1247_v5 }
 0x11d   : > { %v1148_v12 = vadd.f32 %v1116_v9, %v1048_v53  ;;  %v948_v59 = vadd.f32 %v916_v58, %v848_v38 }
 0x11e   : > { %1317 = vst [vmem:[%s2280_s26 + $0xe8] sm:$0xff] %v1285_v45 }
 0x11f   : > { %v1248_v35 = vadd.f32 %v1216_v4, %v1148_v12  ;;  %v1049_v49 = vadd.f32 %v1016_v62, %v948_v59 }
 0x121   : > { %v1286_v52 = vadd.f32 %v2594_v56, %v1248_v35  ;;  %v1149_v13 = vadd.f32 %v1117_v2, %v1049_v49 }
 0x123   : > { %1318 = vst [vmem:[%s2280_s26 + $0xf0] sm:$0xff] %v1286_v52  ;;  %v1249_v33 = vadd.f32 %v1217_v26, %v1149_v13 }
 0x125   : > { %v1287_v61 = vadd.f32 %v2594_v56, %v1249_v33 }
 0x127   : > { %1319 = vst [vmem:[%s2280_s26 + $0xf8] sm:$0xff] %v1287_v61 }
 0x128   : > { %1665 = shalt.err (!%p1662_p2)
}
 0x129   : > { %s1666_s26 = scalar_lea.hbm %s2659_s23, 4096  ;;  %s1670_s25 = scalar_lea.hbm %s2767_s30, 16384 }
 0x12a   : > { %p1667_p8 = scmp.ne.s32.totalorder %s2659_s23, %s1666_s26  ;;  %p1671_p10 = scmp.lt.u32.totalorder %s2659_s23, %s2767_s30 }
 0x12b   : > { %p1672_p11 = scmp.lt.u32.totalorder %s1670_s25, %s1666_s26  ;;  %p1674_p3 = scmp.lt.u32.totalorder %s1666_s26, %s2659_s23 }
 0x12c   : > { %p1668_p13 = pnand %p1667_p8, %p2768_p7 }
 0x12d   : > { %p1673_p0 = por %p1672_p11, %p1671_p10 }
 0x12e   : > { %p1669_p4 = pneg %p1668_p13 }
 0x12f   : > { %p1675_p9 = por %p1674_p3, %p1673_p0 }
 0x131   : > { %p1676_p12 = pnand %p1675_p9, %p1669_p4 }
 0x133   : > { %1679 = shalt.err (!%p1676_p12)
}
 0x134   : > { %s1787_s11 = smov 128   ;;  %s1788_s15 = smov 256  }
 0x135   : > { %s1789_s4 = smov 8  }
 0x136   : > { %1479 = dma.vmem_to_hbm [thread:$0]  (%p2768_p7), %s2661_s24, 4096, %s2659_s23, %s1321_s18, %s1787_s11, %s1788_s15, %s1789_s4  }
 0x137 PF: > { %s2769_s5 = sld [smem:[#allocation12_spill]]  ;;  %p1493_p5 = scmp.ge.s32.totalorder %s1778_s22, 2 }
 0x138   : > { %p2770_p1 = scmp.ne.s32.totalorder %s2751_s8, 0 }
 0x13a   : > { %p1489_p6 = pnand %p1493_p5, %p2770_p1 }
 0x13d   : > { %s1350_s19 = sand.u32 1, %s2769_s5  }
 0x13e   : > { %s1351_s28 = scalar_lea.sflag [#allocation5], %s1350_s19 }
 0x13f   : > { %1733 = dma.done.wait (!%p1489_p6), %s1351_s28, 4096  }
 0x140   : > { %1735 = vsyncadd (!%p1489_p6), %s1351_s28, 4294963200  ;;  %s22_s22 = sadd.s32 1, %s1778_s22   ;;  %s2771_s7 = sld [smem:[#allocation14_spill]] }
 0x141   : > { %p19_p2 = scmp.ge.s32.totalorder %s22_s22, 6   ;;  %s2772_s27 = sld [smem:[#allocation15_spill]] }
 0x142   : > { %s2773_s12 = smov %s1742_s13  ;;  %s2774_s13 = smov %s1746_s14 }
 0x143   : > { %s2775_s14 = smov %s1985_s10  ;;  %s2776_s15 = smov %s1754_s16 }
 0x144   : > { %s2777_s16 = smov %s1758_s17  ;;  %s2778_s17 = smov %s1920_s9 }
 0x145   : > { %s2779_s18 = smov %s1770_s20  ;;  %s2780_s19 = smov %s1774_s21 }
 0x146   : > { %s2781_s20 = smov %s2771_s7  ;;  %21 = sbr.rel (!%p19_p2) target bundleno = 13 (0xd), region = 95 }
 0x147   : > { %s2782_s21 = smov %s2772_s27 }
 0x14d   :  { %1356 = vsyncpa [#allocation4], 1 }
 0x14e   :  { %1358 = vsyncpa [#allocation4 + $0x1], 1 }
 0x14f   :  { %1359 = vsyncpa [#allocation7], 1 }
 0x150   :  { %1361 = vsyncpa [#allocation7 + $0x1], 1 }
 0x151   :  { %1362 = vsyncpa [#allocation5], 1 }
 0x152   :  { %1364 = vsyncpa [#allocation5 + $0x1], 1 }

</bundles_post_ra>
